<compile_context>
chip_gen: v6e
topology: v6e:2x2x1
jax: 0.10.0
libtpu: 0.0.40
codegen_flags: <defaults>
</compile_context>

<pallas_src>
import jax
import jax.numpy as jnp
from jax import lax
from jax.experimental import pallas as pl
from jax.experimental.pallas import tpu as pltpu


def _round_up(x, m):
    return (x + m - 1) // m * m


# PyTorch gate order is [i | f | g | o]; kernel uses [i | f | o | g] so the
# three sigmoid gates form one contiguous slice.
_GATE_ORDER = (0, 1, 3, 2)


def _char_lstm_kernel(x_ref, len_ref, mask_ref, w_in_ref, b_ref, whh_ref,
                      out_ref, gates_scr):
    """Bidirectional char-LSTM over one tile of tokens (tokens on lanes)."""
    tile_n = len_ref.shape[1]
    T = x_ref.shape[1] // tile_n
    Hp = whh_ref.shape[1] // 2          # padded hidden size (multiple of 8)
    G = 4 * Hp                          # gate rows per direction

    # ---- Pass 1: single fused input-projection GEMM for all T timesteps and
    #      both directions, hoisted off the serial critical path.
    gates_scr[...] = (
        jnp.dot(w_in_ref[...], x_ref[...], preferred_element_type=jnp.float32)
        + b_ref[...])

    whh = whh_ref[...]                  # [8Hp, 2Hp] bf16, block-diag (fwd|bwd)
    lens = len_ref[...]                 # [1, tile_n] int32 char lengths
    m = mask_ref[...]                   # [1, tile_n] f32 valid-token mask

    def sig(v):
        # exact identity: sigmoid(x) = 0.5*(tanh(x/2)+1) -> one EUP op
        return 0.5 * jnp.tanh(0.5 * v) + 0.5

    def cell(gates, h, c, active):
        # gate row layout per direction: [i | f | o | g], each Hp rows
        s = sig(gates[:3 * Hp])
        i, f, o = s[:Hp], s[Hp:2 * Hp], s[2 * Hp:3 * Hp]
        g = jnp.tanh(gates[3 * Hp:])
        c_new = f * c + i * g
        h_new = o * jnp.tanh(c_new)
        # only advance state on non-padded char steps (packed-LSTM semantics)
        h = jnp.where(active, h_new, h)
        c = jnp.where(active, c_new, c)
        return h, c

    zeros = jnp.zeros((Hp, tile_n), jnp.float32)
    hf, cf, hb, cb = zeros, zeros, zeros, zeros

    # ---- Pass 2: the true recurrence, unrolled over the small static T.
    #      One block-diagonal MXU push per step covers both directions.
    # TODO(synk): for long char sequences (T >= ~16) switch to
    # lax.fori_loop(..., unroll=2) to bound live ranges.
    for t in range(T):
        tb = T - 1 - t
        h_cat = jnp.concatenate([hf, hb], axis=0).astype(jnp.bfloat16)
        g_rec = jnp.dot(whh, h_cat, preferred_element_type=jnp.float32)
        gates_f = gates_scr[0:G, t * tile_n:(t + 1) * tile_n] + g_rec[:G]
        gates_b = gates_scr[G:2 * G, tb * tile_n:(tb + 1) * tile_n] + g_rec[G:]
        hf, cf = cell(gates_f, hf, cf, lens > t)
        hb, cb = cell(gates_b, hb, cb, lens > tb)

    # scatter-equivalent: zero columns of invalid token slots; two direct
    # lane-dense (tile_n-wide) stores, no concat temp.
    out_ref[0:Hp, :] = hf * m
    out_ref[Hp:2 * Hp, :] = hb * m


def _pack_gate_rows(w, H, H_pad, dtype):
    """PyTorch [4H, in_dim] weight -> [4*H_pad, in_dim], gate order [i|f|o|g],
    each gate's H rows at sublane-aligned offset k*H_pad (zeros elsewhere)."""
    in_dim = w.shape[1]
    out = jnp.zeros((4 * H_pad, in_dim), dtype)
    for k, g in enumerate(_GATE_ORDER):
        out = out.at[k * H_pad:k * H_pad + H, :].set(
            w[g * H:(g + 1) * H, :].astype(dtype))
    return out


def _pack_gate_bias(b, H, H_pad):
    out = jnp.zeros((4 * H_pad, 1), jnp.float32)
    for k, g in enumerate(_GATE_ORDER):
        out = out.at[k * H_pad:k * H_pad + H, 0].set(
            b[g * H:(g + 1) * H].astype(jnp.float32))
    return out


def _pack_hh_blockdiag(w_hh_f, w_hh_b, H, H_pad, dtype):
    """Block-diagonal recurrent weight [8*H_pad, 2*H_pad]: fwd block top-left,
    bwd block bottom-right (padding rows/cols exactly zero)."""
    wf = _pack_gate_rows(w_hh_f, H, H_pad, dtype)     # [4Hp, H]
    wb = _pack_gate_rows(w_hh_b, H, H_pad, dtype)     # [4Hp, H]
    out = jnp.zeros((8 * H_pad, 2 * H_pad), dtype)
    out = out.at[:4 * H_pad, :H].set(wf)
    out = out.at[4 * H_pad:, H_pad:H_pad + H].set(wb)
    return out


def character_lstm_forward(chars, char_lengths, valid_token_mask, emb_table,
                           w_ih_f, w_hh_f, b_ih_f, b_hh_f,
                           w_ih_b, w_hh_b, b_ih_b, b_hh_b):
    B, S, T = chars.shape
    H = w_hh_f.shape[1]              # PyTorch W_hh: [4H, H]
    E = emb_table.shape[1]
    N = B * S
    H_pad = _round_up(H, 8)          # only sublane-align the gates

    # Tokens map to lanes: tile_n is a multiple of 128.  256 on large N fills
    # the 2x256 MXU of v6e/v7x while keeping grid >= 2 for both v7x cores.
    tile_n = 256 if N >= 512 else 128
    N_pad = _round_up(N, tile_n)
    n_tiles = N_pad // tile_n

    # Glue: embedding lookup; char_dropout is identity at inference (eval mode).
    x = emb_table[chars.reshape(N, T)]                       # [N, T, E]
    x = jnp.pad(x, ((0, N_pad - N), (0, 0), (0, 0)))
    x = x.reshape(n_tiles, tile_n, T, E)
    # feature-major, per-tile (t, token) column layout -> one fused pass-1 GEMM
    x2d = jnp.transpose(x, (3, 0, 2, 1)).reshape(
        E, n_tiles * T * tile_n).astype(jnp.bfloat16)

    lens = jnp.pad(char_lengths.reshape(N).astype(jnp.int32),
                   (0, N_pad - N)).reshape(1, N_pad)
    mask = jnp.pad(valid_token_mask.reshape(N).astype(jnp.float32),
                   (0, N_pad - N)).reshape(1, N_pad)

    # MXU operands bf16 (f32 accumulation); biases (b_ih + b_hh) fused & f32.
    w_in = jnp.concatenate([_pack_gate_rows(w_ih_f, H, H_pad, jnp.bfloat16),
                            _pack_gate_rows(w_ih_b, H, H_pad, jnp.bfloat16)],
                           axis=0)                           # [8*Hp, E]
    bias = jnp.concatenate([_pack_gate_bias(b_ih_f + b_hh_f, H, H_pad),
                            _pack_gate_bias(b_ih_b + b_hh_b, H, H_pad)],
                           axis=0)                           # [8*Hp, 1]
    whh = _pack_hh_blockdiag(w_hh_f, w_hh_b, H, H_pad, jnp.bfloat16)

    grid = (n_tiles,)
    out = pl.pallas_call(
        _char_lstm_kernel,
        out_shape=jax.ShapeDtypeStruct((2 * H_pad, N_pad), jnp.float32),
        grid=grid,
        in_specs=[
            pl.BlockSpec((E, T * tile_n), lambda i: (0, i)),         # x (feature-major)
            pl.BlockSpec((1, tile_n), lambda i: (0, i)),             # char lengths
            pl.BlockSpec((1, tile_n), lambda i: (0, i)),             # valid-token mask
            pl.BlockSpec((8 * H_pad, E), lambda i: (0, 0)),          # W_ih (both dirs)
            pl.BlockSpec((8 * H_pad, 1), lambda i: (0, 0)),          # fused bias
            pl.BlockSpec((8 * H_pad, 2 * H_pad), lambda i: (0, 0)),  # W_hh block-diag
        ],
        out_specs=pl.BlockSpec((2 * H_pad, tile_n), lambda i: (0, i)),
        scratch_shapes=[pltpu.VMEM((8 * H_pad, T * tile_n), jnp.float32)],
        compiler_params=pltpu.CompilerParams(
            dimension_semantics=("parallel",)),
    )(x2d, lens, mask, w_in, bias, whh)

    # Strip the (small) sublane padding and return [B, S, 2H].
    hf = out[:H, :N]
    hb = out[H_pad:H_pad + H, :N]
    return jnp.concatenate([hf, hb], axis=0).T.reshape(B, S, 2 * H)


def reference_forward(chars, char_lengths, valid_token_mask, emb_table,
                      w_ih_f, w_hh_f, b_ih_f, b_hh_f,
                      w_ih_b, w_hh_b, b_ih_b, b_hh_b):
    """Pure-JAX f32 reference for correctness checking."""
    B, S, T = chars.shape
    H = w_hh_f.shape[1]
    N = B * S
    x = emb_table[chars.reshape(N, T)].astype(jnp.float32)   # [N, T, E]
    lens = char_lengths.reshape(N)

    def run_dir(wih, whh, b, reverse):
        def step(carry, t):
            h, c = carry
            idx = (T - 1 - t) if reverse else t
            xt = x[:, idx, :]
            gates = xt @ wih.T + h @ whh.T + b
            i = jax.nn.sigmoid(gates[:, :H])
            f = jax.nn.sigmoid(gates[:, H:2 * H])
            g = jnp.tanh(gates[:, 2 * H:3 * H])
            o = jax.nn.sigmoid(gates[:, 3 * H:])
            c_new = f * c + i * g
            h_new = o * jnp.tanh(c_new)
            active = (lens > idx)[:, None]
            h = jnp.where(active, h_new, h)
            c = jnp.where(active, c_new, c)
            return (h, c), None
        init = (jnp.zeros((N, H), jnp.float32), jnp.zeros((N, H), jnp.float32))
        (h, _), _ = lax.scan(step, init, jnp.arange(T))
        return h

    hf = run_dir(w_ih_f, w_hh_f, b_ih_f + b_hh_f, reverse=False)
    hb = run_dir(w_ih_b, w_hh_b, b_ih_b + b_hh_b, reverse=True)
    out = jnp.concatenate([hf, hb], axis=-1)
    out = out * valid_token_mask.reshape(N, 1).astype(jnp.float32)
    return out.reshape(B, S, 2 * H)


if __name__ == "__main__":
    key = jax.random.PRNGKey(0)
    B, S, T = 2, 8, 6              # batch, tokens per sentence, max chars per token
    vocab, E, d_out = 32, 16, 32   # char vocab, d_embedding, d_out
    H = d_out // 2

    keys = jax.random.split(key, 11)

    def init(k, shape):
        return jax.random.uniform(k, shape, jnp.float32, -0.25, 0.25)

    emb_table = jax.random.normal(keys[0], (vocab, E), jnp.float32) * 0.1
    w_ih_f = init(keys[1], (4 * H, E))
    w_hh_f = init(keys[2], (4 * H, H))
    b_ih_f = init(keys[3], (4 * H,))
    b_hh_f = init(keys[4], (4 * H,))
    w_ih_b = init(keys[5], (4 * H, E))
    w_hh_b = init(keys[6], (4 * H, H))
    b_ih_b = init(keys[7], (4 * H,))
    b_hh_b = init(keys[8], (4 * H,))

    chars = jax.random.randint(keys[9], (B, S, T), 0, vocab)
    valid_token_mask = jnp.array(
        [[1, 1, 1, 1, 1, 1, 0, 0],
         [1, 1, 1, 1, 0, 1, 1, 0]], dtype=jnp.bool_)
    raw_lens = jax.random.randint(keys[10], (B, S), 1, T + 1)
    char_lengths = jnp.where(valid_token_mask, raw_lens, 0)

    # TODO(synk): char_dropout(p=0.2) is stochastic at train time; implemented
    # as eval-mode identity here.

    args = (chars, char_lengths, valid_token_mask, emb_table,
            w_ih_f, w_hh_f, b_ih_f, b_hh_f,
            w_ih_b, w_hh_b, b_ih_b, b_hh_b)

    out = character_lstm_forward(*args)
    out = jax.block_until_ready(out)

    ref = reference_forward(*args)
    assert out.shape == (B, S, d_out), out.shape
    assert jnp.allclose(out, ref, atol=5e-2, rtol=5e-2), \
        float(jnp.max(jnp.abs(out - ref)))

    print("KERNEL_OK")
</pallas_src>

<mosaic_0001>
module attributes {stable_mosaic.version = 11 : i64} {
  func.func @_char_lstm_kernel(%arg0: i32, %arg1: memref<16x768xbf16, #tpu.memory_space<vmem>>, %arg2: memref<1x128xi32, #tpu.memory_space<vmem>>, %arg3: memref<1x128xf32, #tpu.memory_space<vmem>>, %arg4: memref<128x16xbf16, #tpu.memory_space<vmem>>, %arg5: memref<128x1xf32, #tpu.memory_space<vmem>>, %arg6: memref<128x32xbf16, #tpu.memory_space<vmem>>, %arg7: memref<32x128xf32, #tpu.memory_space<vmem>>, %arg8: memref<128x768xf32, #tpu.memory_space<vmem>>) attributes {dimension_semantics = [#tpu.dimension_semantics<parallel>], iteration_bounds = array<i64: 1>, scalar_prefetch = 0 : i64, scratch_operands = 1 : i64, tpu.core_type = #tpu.core_type<tc>, window_params = [{transform_indices = @transform_0, window_bounds = array<i64: 16, 768>}, {transform_indices = @transform_1, window_bounds = array<i64: 1, 128>}, {transform_indices = @transform_2, window_bounds = array<i64: 1, 128>}, {pipeline_mode = #tpu.pipeline_mode<synchronous>, transform_indices = @transform_3, window_bounds = array<i64: 128, 16>}, {pipeline_mode = #tpu.pipeline_mode<synchronous>, transform_indices = @transform_4, window_bounds = array<i64: 128, 1>}, {pipeline_mode = #tpu.pipeline_mode<synchronous>, transform_indices = @transform_5, window_bounds = array<i64: 128, 32>}, {transform_indices = @transform_6, window_bounds = array<i64: 32, 128>}]} {
    %c0 = arith.constant 0 : index
    %c0_0 = arith.constant 0 : index
    %0 = vector.load %arg4[%c0, %c0_0] : memref<128x16xbf16, #tpu.memory_space<vmem>>, vector<128x16xbf16>
    %c0_1 = arith.constant 0 : index
    %c0_2 = arith.constant 0 : index
    %1 = vector.load %arg1[%c0_1, %c0_2] : memref<16x768xbf16, #tpu.memory_space<vmem>>, vector<16x768xbf16>
    %cst = arith.constant dense<0.000000e+00> : vector<128x768xf32>
    %2 = tpu.matmul %0, %1, %cst {dimension_numbers = #tpu.dot_dimension_numbers<[1], [0], [0], [1], [0, 0, 1, 1], [], []>} : vector<128x16xbf16>, vector<16x768xbf16>, vector<128x768xf32> -> vector<128x768xf32>
    %c0_3 = arith.constant 0 : index
    %c0_4 = arith.constant 0 : index
    %3 = vector.load %arg5[%c0_3, %c0_4] : memref<128x1xf32, #tpu.memory_space<vmem>>, vector<128x1xf32>
    %4 = vector.broadcast %3 : vector<128x1xf32> to vector<128x768xf32>
    %5 = arith.addf %2, %4 : vector<128x768xf32>
    %c0_5 = arith.constant 0 : index
    %c0_6 = arith.constant 0 : index
    %6 = vector.load %arg8[%c0_5, %c0_6] : memref<128x768xf32, #tpu.memory_space<vmem>>, vector<128x768xf32>
    tpu.vector_store %arg8[%c0_5, %c0_6], %5 {strides = array<i32>} : memref<128x768xf32, #tpu.memory_space<vmem>>, vector<128x768xf32>,
    %c0_7 = arith.constant 0 : index
    %c0_8 = arith.constant 0 : index
    %7 = vector.load %arg6[%c0_7, %c0_8] : memref<128x32xbf16, #tpu.memory_space<vmem>>, vector<128x32xbf16>
    %c0_9 = arith.constant 0 : index
    %c0_10 = arith.constant 0 : index
    %8 = vector.load %arg2[%c0_9, %c0_10] : memref<1x128xi32, #tpu.memory_space<vmem>>, vector<1x128xi32>
    %c0_11 = arith.constant 0 : index
    %c0_12 = arith.constant 0 : index
    %9 = vector.load %arg3[%c0_11, %c0_12] : memref<1x128xf32, #tpu.memory_space<vmem>>, vector<1x128xf32>
    %cst_13 = arith.constant 0.000000e+00 : f32
    %10 = vector.broadcast %cst_13 : f32 to vector<16x128xf32>
    %11 = tpu.concatenate %10, %10 in 0 : vector<16x128xf32>, vector<16x128xf32> -> vector<32x128xf32>
    %12 = arith.truncf %11 : vector<32x128xf32> to vector<32x128xbf16>
    %cst_14 = arith.constant dense<0.000000e+00> : vector<128x128xf32>
    %13 = tpu.matmul %7, %12, %cst_14 {dimension_numbers = #tpu.dot_dimension_numbers<[1], [0], [0], [1], [0, 0, 1, 1], [], []>} : vector<128x32xbf16>, vector<32x128xbf16>, vector<128x128xf32> -> vector<128x128xf32>
    %c0_15 = arith.constant 0 : index
    %c0_16 = arith.constant 0 : index
    %14 = vector.load %arg8[%c0_15, %c0_16] : memref<128x768xf32, #tpu.memory_space<vmem>>, vector<64x128xf32>
    %15 = vector.extract_strided_slice %13 {offsets = [0, 0], sizes = [64, 128], strides = [1, 1]} : vector<128x128xf32> to vector<64x128xf32>
    %16 = arith.addf %14, %15 : vector<64x128xf32>
    %c64 = arith.constant 64 : index
    %c640 = arith.constant 640 : index
    %17 = vector.load %arg8[%c64, %c640] : memref<128x768xf32, #tpu.memory_space<vmem>>, vector<64x128xf32>
    %18 = vector.extract_strided_slice %13 {offsets = [64, 0], sizes = [64, 128], strides = [1, 1]} : vector<128x128xf32> to vector<64x128xf32>
    %19 = arith.addf %17, %18 : vector<64x128xf32>
    %c0_i32 = arith.constant 0 : i32
    %20 = vector.broadcast %c0_i32 : i32 to vector<1x128xi32>
    %21 = arith.cmpi sgt, %8, %20 : vector<1x128xi32>
    %22 = vector.extract_strided_slice %16 {offsets = [0, 0], sizes = [48, 128], strides = [1, 1]} : vector<64x128xf32> to vector<48x128xf32>
    %cst_17 = arith.constant 5.000000e-01 : f32
    %23 = vector.broadcast %cst_17 : f32 to vector<48x128xf32>
    %24 = arith.mulf %23, %22 : vector<48x128xf32>
    %25 = math.tanh %24 : vector<48x128xf32>
    %cst_18 = arith.constant 5.000000e-01 : f32
    %26 = vector.broadcast %cst_18 : f32 to vector<48x128xf32>
    %27 = arith.mulf %26, %25 : vector<48x128xf32>
    %cst_19 = arith.constant 5.000000e-01 : f32
    %28 = vector.broadcast %cst_19 : f32 to vector<48x128xf32>
    %29 = arith.addf %27, %28 : vector<48x128xf32>
    %30 = vector.extract_strided_slice %29 {offsets = [0, 0], sizes = [16, 128], strides = [1, 1]} : vector<48x128xf32> to vector<16x128xf32>
    %31 = vector.extract_strided_slice %29 {offsets = [16, 0], sizes = [16, 128], strides = [1, 1]} : vector<48x128xf32> to vector<16x128xf32>
    %32 = vector.extract_strided_slice %29 {offsets = [32, 0], sizes = [16, 128], strides = [1, 1]} : vector<48x128xf32> to vector<16x128xf32>
    %33 = vector.extract_strided_slice %16 {offsets = [48, 0], sizes = [16, 128], strides = [1, 1]} : vector<64x128xf32> to vector<16x128xf32>
    %34 = math.tanh %33 : vector<16x128xf32>
    %35 = arith.mulf %31, %10 : vector<16x128xf32>
    %36 = arith.mulf %30, %34 : vector<16x128xf32>
    %37 = arith.addf %35, %36 : vector<16x128xf32>
    %38 = math.tanh %37 : vector<16x128xf32>
    %39 = arith.mulf %32, %38 : vector<16x128xf32>
    %40 = vector.shape_cast %21 : vector<1x128xi1> to vector<1x128xi1>
    %41 = vector.broadcast %40 : vector<1x128xi1> to vector<16x128xi1>
    %42 = arith.select %41, %39, %10 : vector<16x128xi1>, vector<16x128xf32>
    %43 = vector.shape_cast %21 : vector<1x128xi1> to vector<1x128xi1>
    %44 = vector.broadcast %43 : vector<1x128xi1> to vector<16x128xi1>
    %45 = arith.select %44, %37, %10 : vector<16x128xi1>, vector<16x128xf32>
    %c5_i32 = arith.constant 5 : i32
    %46 = vector.broadcast %c5_i32 : i32 to vector<1x128xi32>
    %47 = arith.cmpi sgt, %8, %46 : vector<1x128xi32>
    %48 = vector.extract_strided_slice %19 {offsets = [0, 0], sizes = [48, 128], strides = [1, 1]} : vector<64x128xf32> to vector<48x128xf32>
    %cst_20 = arith.constant 5.000000e-01 : f32
    %49 = vector.broadcast %cst_20 : f32 to vector<48x128xf32>
    %50 = arith.mulf %49, %48 : vector<48x128xf32>
    %51 = math.tanh %50 : vector<48x128xf32>
    %cst_21 = arith.constant 5.000000e-01 : f32
    %52 = vector.broadcast %cst_21 : f32 to vector<48x128xf32>
    %53 = arith.mulf %52, %51 : vector<48x128xf32>
    %cst_22 = arith.constant 5.000000e-01 : f32
    %54 = vector.broadcast %cst_22 : f32 to vector<48x128xf32>
    %55 = arith.addf %53, %54 : vector<48x128xf32>
    %56 = vector.extract_strided_slice %55 {offsets = [0, 0], sizes = [16, 128], strides = [1, 1]} : vector<48x128xf32> to vector<16x128xf32>
    %57 = vector.extract_strided_slice %55 {offsets = [16, 0], sizes = [16, 128], strides = [1, 1]} : vector<48x128xf32> to vector<16x128xf32>
    %58 = vector.extract_strided_slice %55 {offsets = [32, 0], sizes = [16, 128], strides = [1, 1]} : vector<48x128xf32> to vector<16x128xf32>
    %59 = vector.extract_strided_slice %19 {offsets = [48, 0], sizes = [16, 128], strides = [1, 1]} : vector<64x128xf32> to vector<16x128xf32>
    %60 = math.tanh %59 : vector<16x128xf32>
    %61 = arith.mulf %57, %10 : vector<16x128xf32>
    %62 = arith.mulf %56, %60 : vector<16x128xf32>
    %63 = arith.addf %61, %62 : vector<16x128xf32>
    %64 = math.tanh %63 : vector<16x128xf32>
    %65 = arith.mulf %58, %64 : vector<16x128xf32>
    %66 = vector.shape_cast %47 : vector<1x128xi1> to vector<1x128xi1>
    %67 = vector.broadcast %66 : vector<1x128xi1> to vector<16x128xi1>
    %68 = arith.select %67, %65, %10 : vector<16x128xi1>, vector<16x128xf32>
    %69 = vector.shape_cast %47 : vector<1x128xi1> to vector<1x128xi1>
    %70 = vector.broadcast %69 : vector<1x128xi1> to vector<16x128xi1>
    %71 = arith.select %70, %63, %10 : vector<16x128xi1>, vector<16x128xf32>
    %72 = tpu.concatenate %42, %68 in 0 : vector<16x128xf32>, vector<16x128xf32> -> vector<32x128xf32>
    %73 = arith.truncf %72 : vector<32x128xf32> to vector<32x128xbf16>
    %cst_23 = arith.constant dense<0.000000e+00> : vector<128x128xf32>
    %74 = tpu.matmul %7, %73, %cst_23 {dimension_numbers = #tpu.dot_dimension_numbers<[1], [0], [0], [1], [0, 0, 1, 1], [], []>} : vector<128x32xbf16>, vector<32x128xbf16>, vector<128x128xf32> -> vector<128x128xf32>
    %c0_24 = arith.constant 0 : index
    %c128 = arith.constant 128 : index
    %75 = vector.load %arg8[%c0_24, %c128] : memref<128x768xf32, #tpu.memory_space<vmem>>, vector<64x128xf32>
    %76 = vector.extract_strided_slice %74 {offsets = [0, 0], sizes = [64, 128], strides = [1, 1]} : vector<128x128xf32> to vector<64x128xf32>
    %77 = arith.addf %75, %76 : vector<64x128xf32>
    %c64_25 = arith.constant 64 : index
    %c512 = arith.constant 512 : index
    %78 = vector.load %arg8[%c64_25, %c512] : memref<128x768xf32, #tpu.memory_space<vmem>>, vector<64x128xf32>
    %79 = vector.extract_strided_slice %74 {offsets = [64, 0], sizes = [64, 128], strides = [1, 1]} : vector<128x128xf32> to vector<64x128xf32>
    %80 = arith.addf %78, %79 : vector<64x128xf32>
    %c1_i32 = arith.constant 1 : i32
    %81 = vector.broadcast %c1_i32 : i32 to vector<1x128xi32>
    %82 = arith.cmpi sgt, %8, %81 : vector<1x128xi32>
    %83 = vector.extract_strided_slice %77 {offsets = [0, 0], sizes = [48, 128], strides = [1, 1]} : vector<64x128xf32> to vector<48x128xf32>
    %cst_26 = arith.constant 5.000000e-01 : f32
    %84 = vector.broadcast %cst_26 : f32 to vector<48x128xf32>
    %85 = arith.mulf %84, %83 : vector<48x128xf32>
    %86 = math.tanh %85 : vector<48x128xf32>
    %cst_27 = arith.constant 5.000000e-01 : f32
    %87 = vector.broadcast %cst_27 : f32 to vector<48x128xf32>
    %88 = arith.mulf %87, %86 : vector<48x128xf32>
    %cst_28 = arith.constant 5.000000e-01 : f32
    %89 = vector.broadcast %cst_28 : f32 to vector<48x128xf32>
    %90 = arith.addf %88, %89 : vector<48x128xf32>
    %91 = vector.extract_strided_slice %90 {offsets = [0, 0], sizes = [16, 128], strides = [1, 1]} : vector<48x128xf32> to vector<16x128xf32>
    %92 = vector.extract_strided_slice %90 {offsets = [16, 0], sizes = [16, 128], strides = [1, 1]} : vector<48x128xf32> to vector<16x128xf32>
    %93 = vector.extract_strided_slice %90 {offsets = [32, 0], sizes = [16, 128], strides = [1, 1]} : vector<48x128xf32> to vector<16x128xf32>
    %94 = vector.extract_strided_slice %77 {offsets = [48, 0], sizes = [16, 128], strides = [1, 1]} : vector<64x128xf32> to vector<16x128xf32>
    %95 = math.tanh %94 : vector<16x128xf32>
    %96 = arith.mulf %92, %45 : vector<16x128xf32>
    %97 = arith.mulf %91, %95 : vector<16x128xf32>
    %98 = arith.addf %96, %97 : vector<16x128xf32>
    %99 = math.tanh %98 : vector<16x128xf32>
    %100 = arith.mulf %93, %99 : vector<16x128xf32>
    %101 = vector.shape_cast %82 : vector<1x128xi1> to vector<1x128xi1>
    %102 = vector.broadcast %101 : vector<1x128xi1> to vector<16x128xi1>
    %103 = arith.select %102, %100, %42 : vector<16x128xi1>, vector<16x128xf32>
    %104 = vector.shape_cast %82 : vector<1x128xi1> to vector<1x128xi1>
    %105 = vector.broadcast %104 : vector<1x128xi1> to vector<16x128xi1>
    %106 = arith.select %105, %98, %45 : vector<16x128xi1>, vector<16x128xf32>
    %c4_i32 = arith.constant 4 : i32
    %107 = vector.broadcast %c4_i32 : i32 to vector<1x128xi32>
    %108 = arith.cmpi sgt, %8, %107 : vector<1x128xi32>
    %109 = vector.extract_strided_slice %80 {offsets = [0, 0], sizes = [48, 128], strides = [1, 1]} : vector<64x128xf32> to vector<48x128xf32>
    %cst_29 = arith.constant 5.000000e-01 : f32
    %110 = vector.broadcast %cst_29 : f32 to vector<48x128xf32>
    %111 = arith.mulf %110, %109 : vector<48x128xf32>
    %112 = math.tanh %111 : vector<48x128xf32>
    %cst_30 = arith.constant 5.000000e-01 : f32
    %113 = vector.broadcast %cst_30 : f32 to vector<48x128xf32>
    %114 = arith.mulf %113, %112 : vector<48x128xf32>
    %cst_31 = arith.constant 5.000000e-01 : f32
    %115 = vector.broadcast %cst_31 : f32 to vector<48x128xf32>
    %116 = arith.addf %114, %115 : vector<48x128xf32>
    %117 = vector.extract_strided_slice %116 {offsets = [0, 0], sizes = [16, 128], strides = [1, 1]} : vector<48x128xf32> to vector<16x128xf32>
    %118 = vector.extract_strided_slice %116 {offsets = [16, 0], sizes = [16, 128], strides = [1, 1]} : vector<48x128xf32> to vector<16x128xf32>
    %119 = vector.extract_strided_slice %116 {offsets = [32, 0], sizes = [16, 128], strides = [1, 1]} : vector<48x128xf32> to vector<16x128xf32>
    %120 = vector.extract_strided_slice %80 {offsets = [48, 0], sizes = [16, 128], strides = [1, 1]} : vector<64x128xf32> to vector<16x128xf32>
    %121 = math.tanh %120 : vector<16x128xf32>
    %122 = arith.mulf %118, %71 : vector<16x128xf32>
    %123 = arith.mulf %117, %121 : vector<16x128xf32>
    %124 = arith.addf %122, %123 : vector<16x128xf32>
    %125 = math.tanh %124 : vector<16x128xf32>
    %126 = arith.mulf %119, %125 : vector<16x128xf32>
    %127 = vector.shape_cast %108 : vector<1x128xi1> to vector<1x128xi1>
    %128 = vector.broadcast %127 : vector<1x128xi1> to vector<16x128xi1>
    %129 = arith.select %128, %126, %68 : vector<16x128xi1>, vector<16x128xf32>
    %130 = vector.shape_cast %108 : vector<1x128xi1> to vector<1x128xi1>
    %131 = vector.broadcast %130 : vector<1x128xi1> to vector<16x128xi1>
    %132 = arith.select %131, %124, %71 : vector<16x128xi1>, vector<16x128xf32>
    %133 = tpu.concatenate %103, %129 in 0 : vector<16x128xf32>, vector<16x128xf32> -> vector<32x128xf32>
    %134 = arith.truncf %133 : vector<32x128xf32> to vector<32x128xbf16>
    %cst_32 = arith.constant dense<0.000000e+00> : vector<128x128xf32>
    %135 = tpu.matmul %7, %134, %cst_32 {dimension_numbers = #tpu.dot_dimension_numbers<[1], [0], [0], [1], [0, 0, 1, 1], [], []>} : vector<128x32xbf16>, vector<32x128xbf16>, vector<128x128xf32> -> vector<128x128xf32>
    %c0_33 = arith.constant 0 : index
    %c256 = arith.constant 256 : index
    %136 = vector.load %arg8[%c0_33, %c256] : memref<128x768xf32, #tpu.memory_space<vmem>>, vector<64x128xf32>
    %137 = vector.extract_strided_slice %135 {offsets = [0, 0], sizes = [64, 128], strides = [1, 1]} : vector<128x128xf32> to vector<64x128xf32>
    %138 = arith.addf %136, %137 : vector<64x128xf32>
    %c64_34 = arith.constant 64 : index
    %c384 = arith.constant 384 : index
    %139 = vector.load %arg8[%c64_34, %c384] : memref<128x768xf32, #tpu.memory_space<vmem>>, vector<64x128xf32>
    %140 = vector.extract_strided_slice %135 {offsets = [64, 0], sizes = [64, 128], strides = [1, 1]} : vector<128x128xf32> to vector<64x128xf32>
    %141 = arith.addf %139, %140 : vector<64x128xf32>
    %c2_i32 = arith.constant 2 : i32
    %142 = vector.broadcast %c2_i32 : i32 to vector<1x128xi32>
    %143 = arith.cmpi sgt, %8, %142 : vector<1x128xi32>
    %144 = vector.extract_strided_slice %138 {offsets = [0, 0], sizes = [48, 128], strides = [1, 1]} : vector<64x128xf32> to vector<48x128xf32>
    %cst_35 = arith.constant 5.000000e-01 : f32
    %145 = vector.broadcast %cst_35 : f32 to vector<48x128xf32>
    %146 = arith.mulf %145, %144 : vector<48x128xf32>
    %147 = math.tanh %146 : vector<48x128xf32>
    %cst_36 = arith.constant 5.000000e-01 : f32
    %148 = vector.broadcast %cst_36 : f32 to vector<48x128xf32>
    %149 = arith.mulf %148, %147 : vector<48x128xf32>
    %cst_37 = arith.constant 5.000000e-01 : f32
    %150 = vector.broadcast %cst_37 : f32 to vector<48x128xf32>
    %151 = arith.addf %149, %150 : vector<48x128xf32>
    %152 = vector.extract_strided_slice %151 {offsets = [0, 0], sizes = [16, 128], strides = [1, 1]} : vector<48x128xf32> to vector<16x128xf32>
    %153 = vector.extract_strided_slice %151 {offsets = [16, 0], sizes = [16, 128], strides = [1, 1]} : vector<48x128xf32> to vector<16x128xf32>
    %154 = vector.extract_strided_slice %151 {offsets = [32, 0], sizes = [16, 128], strides = [1, 1]} : vector<48x128xf32> to vector<16x128xf32>
    %155 = vector.extract_strided_slice %138 {offsets = [48, 0], sizes = [16, 128], strides = [1, 1]} : vector<64x128xf32> to vector<16x128xf32>
    %156 = math.tanh %155 : vector<16x128xf32>
    %157 = arith.mulf %153, %106 : vector<16x128xf32>
    %158 = arith.mulf %152, %156 : vector<16x128xf32>
    %159 = arith.addf %157, %158 : vector<16x128xf32>
    %160 = math.tanh %159 : vector<16x128xf32>
    %161 = arith.mulf %154, %160 : vector<16x128xf32>
    %162 = vector.shape_cast %143 : vector<1x128xi1> to vector<1x128xi1>
    %163 = vector.broadcast %162 : vector<1x128xi1> to vector<16x128xi1>
    %164 = arith.select %163, %161, %103 : vector<16x128xi1>, vector<16x128xf32>
    %165 = vector.shape_cast %143 : vector<1x128xi1> to vector<1x128xi1>
    %166 = vector.broadcast %165 : vector<1x128xi1> to vector<16x128xi1>
    %167 = arith.select %166, %159, %106 : vector<16x128xi1>, vector<16x128xf32>
    %c3_i32 = arith.constant 3 : i32
    %168 = vector.broadcast %c3_i32 : i32 to vector<1x128xi32>
    %169 = arith.cmpi sgt, %8, %168 : vector<1x128xi32>
    %170 = vector.extract_strided_slice %141 {offsets = [0, 0], sizes = [48, 128], strides = [1, 1]} : vector<64x128xf32> to vector<48x128xf32>
    %cst_38 = arith.constant 5.000000e-01 : f32
    %171 = vector.broadcast %cst_38 : f32 to vector<48x128xf32>
    %172 = arith.mulf %171, %170 : vector<48x128xf32>
    %173 = math.tanh %172 : vector<48x128xf32>
    %cst_39 = arith.constant 5.000000e-01 : f32
    %174 = vector.broadcast %cst_39 : f32 to vector<48x128xf32>
    %175 = arith.mulf %174, %173 : vector<48x128xf32>
    %cst_40 = arith.constant 5.000000e-01 : f32
    %176 = vector.broadcast %cst_40 : f32 to vector<48x128xf32>
    %177 = arith.addf %175, %176 : vector<48x128xf32>
    %178 = vector.extract_strided_slice %177 {offsets = [0, 0], sizes = [16, 128], strides = [1, 1]} : vector<48x128xf32> to vector<16x128xf32>
    %179 = vector.extract_strided_slice %177 {offsets = [16, 0], sizes = [16, 128], strides = [1, 1]} : vector<48x128xf32> to vector<16x128xf32>
    %180 = vector.extract_strided_slice %177 {offsets = [32, 0], sizes = [16, 128], strides = [1, 1]} : vector<48x128xf32> to vector<16x128xf32>
    %181 = vector.extract_strided_slice %141 {offsets = [48, 0], sizes = [16, 128], strides = [1, 1]} : vector<64x128xf32> to vector<16x128xf32>
    %182 = math.tanh %181 : vector<16x128xf32>
    %183 = arith.mulf %179, %132 : vector<16x128xf32>
    %184 = arith.mulf %178, %182 : vector<16x128xf32>
    %185 = arith.addf %183, %184 : vector<16x128xf32>
    %186 = math.tanh %185 : vector<16x128xf32>
    %187 = arith.mulf %180, %186 : vector<16x128xf32>
    %188 = vector.shape_cast %169 : vector<1x128xi1> to vector<1x128xi1>
    %189 = vector.broadcast %188 : vector<1x128xi1> to vector<16x128xi1>
    %190 = arith.select %189, %187, %129 : vector<16x128xi1>, vector<16x128xf32>
    %191 = vector.shape_cast %169 : vector<1x128xi1> to vector<1x128xi1>
    %192 = vector.broadcast %191 : vector<1x128xi1> to vector<16x128xi1>
    %193 = arith.select %192, %185, %132 : vector<16x128xi1>, vector<16x128xf32>
    %194 = tpu.concatenate %164, %190 in 0 : vector<16x128xf32>, vector<16x128xf32> -> vector<32x128xf32>
    %195 = arith.truncf %194 : vector<32x128xf32> to vector<32x128xbf16>
    %cst_41 = arith.constant dense<0.000000e+00> : vector<128x128xf32>
    %196 = tpu.matmul %7, %195, %cst_41 {dimension_numbers = #tpu.dot_dimension_numbers<[1], [0], [0], [1], [0, 0, 1, 1], [], []>} : vector<128x32xbf16>, vector<32x128xbf16>, vector<128x128xf32> -> vector<128x128xf32>
    %c0_42 = arith.constant 0 : index
    %c384_43 = arith.constant 384 : index
    %197 = vector.load %arg8[%c0_42, %c384_43] : memref<128x768xf32, #tpu.memory_space<vmem>>, vector<64x128xf32>
    %198 = vector.extract_strided_slice %196 {offsets = [0, 0], sizes = [64, 128], strides = [1, 1]} : vector<128x128xf32> to vector<64x128xf32>
    %199 = arith.addf %197, %198 : vector<64x128xf32>
    %c64_44 = arith.constant 64 : index
    %c256_45 = arith.constant 256 : index
    %200 = vector.load %arg8[%c64_44, %c256_45] : memref<128x768xf32, #tpu.memory_space<vmem>>, vector<64x128xf32>
    %201 = vector.extract_strided_slice %196 {offsets = [64, 0], sizes = [64, 128], strides = [1, 1]} : vector<128x128xf32> to vector<64x128xf32>
    %202 = arith.addf %200, %201 : vector<64x128xf32>
    %c3_i32_46 = arith.constant 3 : i32
    %203 = vector.broadcast %c3_i32_46 : i32 to vector<1x128xi32>
    %204 = arith.cmpi sgt, %8, %203 : vector<1x128xi32>
    %205 = vector.extract_strided_slice %199 {offsets = [0, 0], sizes = [48, 128], strides = [1, 1]} : vector<64x128xf32> to vector<48x128xf32>
    %cst_47 = arith.constant 5.000000e-01 : f32
    %206 = vector.broadcast %cst_47 : f32 to vector<48x128xf32>
    %207 = arith.mulf %206, %205 : vector<48x128xf32>
    %208 = math.tanh %207 : vector<48x128xf32>
    %cst_48 = arith.constant 5.000000e-01 : f32
    %209 = vector.broadcast %cst_48 : f32 to vector<48x128xf32>
    %210 = arith.mulf %209, %208 : vector<48x128xf32>
    %cst_49 = arith.constant 5.000000e-01 : f32
    %211 = vector.broadcast %cst_49 : f32 to vector<48x128xf32>
    %212 = arith.addf %210, %211 : vector<48x128xf32>
    %213 = vector.extract_strided_slice %212 {offsets = [0, 0], sizes = [16, 128], strides = [1, 1]} : vector<48x128xf32> to vector<16x128xf32>
    %214 = vector.extract_strided_slice %212 {offsets = [16, 0], sizes = [16, 128], strides = [1, 1]} : vector<48x128xf32> to vector<16x128xf32>
    %215 = vector.extract_strided_slice %212 {offsets = [32, 0], sizes = [16, 128], strides = [1, 1]} : vector<48x128xf32> to vector<16x128xf32>
    %216 = vector.extract_strided_slice %199 {offsets = [48, 0], sizes = [16, 128], strides = [1, 1]} : vector<64x128xf32> to vector<16x128xf32>
    %217 = math.tanh %216 : vector<16x128xf32>
    %218 = arith.mulf %214, %167 : vector<16x128xf32>
    %219 = arith.mulf %213, %217 : vector<16x128xf32>
    %220 = arith.addf %218, %219 : vector<16x128xf32>
    %221 = math.tanh %220 : vector<16x128xf32>
    %222 = arith.mulf %215, %221 : vector<16x128xf32>
    %223 = vector.shape_cast %204 : vector<1x128xi1> to vector<1x128xi1>
    %224 = vector.broadcast %223 : vector<1x128xi1> to vector<16x128xi1>
    %225 = arith.select %224, %222, %164 : vector<16x128xi1>, vector<16x128xf32>
    %226 = vector.shape_cast %204 : vector<1x128xi1> to vector<1x128xi1>
    %227 = vector.broadcast %226 : vector<1x128xi1> to vector<16x128xi1>
    %228 = arith.select %227, %220, %167 : vector<16x128xi1>, vector<16x128xf32>
    %c2_i32_50 = arith.constant 2 : i32
    %229 = vector.broadcast %c2_i32_50 : i32 to vector<1x128xi32>
    %230 = arith.cmpi sgt, %8, %229 : vector<1x128xi32>
    %231 = vector.extract_strided_slice %202 {offsets = [0, 0], sizes = [48, 128], strides = [1, 1]} : vector<64x128xf32> to vector<48x128xf32>
    %cst_51 = arith.constant 5.000000e-01 : f32
    %232 = vector.broadcast %cst_51 : f32 to vector<48x128xf32>
    %233 = arith.mulf %232, %231 : vector<48x128xf32>
    %234 = math.tanh %233 : vector<48x128xf32>
    %cst_52 = arith.constant 5.000000e-01 : f32
    %235 = vector.broadcast %cst_52 : f32 to vector<48x128xf32>
    %236 = arith.mulf %235, %234 : vector<48x128xf32>
    %cst_53 = arith.constant 5.000000e-01 : f32
    %237 = vector.broadcast %cst_53 : f32 to vector<48x128xf32>
    %238 = arith.addf %236, %237 : vector<48x128xf32>
    %239 = vector.extract_strided_slice %238 {offsets = [0, 0], sizes = [16, 128], strides = [1, 1]} : vector<48x128xf32> to vector<16x128xf32>
    %240 = vector.extract_strided_slice %238 {offsets = [16, 0], sizes = [16, 128], strides = [1, 1]} : vector<48x128xf32> to vector<16x128xf32>
    %241 = vector.extract_strided_slice %238 {offsets = [32, 0], sizes = [16, 128], strides = [1, 1]} : vector<48x128xf32> to vector<16x128xf32>
    %242 = vector.extract_strided_slice %202 {offsets = [48, 0], sizes = [16, 128], strides = [1, 1]} : vector<64x128xf32> to vector<16x128xf32>
    %243 = math.tanh %242 : vector<16x128xf32>
    %244 = arith.mulf %240, %193 : vector<16x128xf32>
    %245 = arith.mulf %239, %243 : vector<16x128xf32>
    %246 = arith.addf %244, %245 : vector<16x128xf32>
    %247 = math.tanh %246 : vector<16x128xf32>
    %248 = arith.mulf %241, %247 : vector<16x128xf32>
    %249 = vector.shape_cast %230 : vector<1x128xi1> to vector<1x128xi1>
    %250 = vector.broadcast %249 : vector<1x128xi1> to vector<16x128xi1>
    %251 = arith.select %250, %248, %190 : vector<16x128xi1>, vector<16x128xf32>
    %252 = vector.shape_cast %230 : vector<1x128xi1> to vector<1x128xi1>
    %253 = vector.broadcast %252 : vector<1x128xi1> to vector<16x128xi1>
    %254 = arith.select %253, %246, %193 : vector<16x128xi1>, vector<16x128xf32>
    %255 = tpu.concatenate %225, %251 in 0 : vector<16x128xf32>, vector<16x128xf32> -> vector<32x128xf32>
    %256 = arith.truncf %255 : vector<32x128xf32> to vector<32x128xbf16>
    %cst_54 = arith.constant dense<0.000000e+00> : vector<128x128xf32>
    %257 = tpu.matmul %7, %256, %cst_54 {dimension_numbers = #tpu.dot_dimension_numbers<[1], [0], [0], [1], [0, 0, 1, 1], [], []>} : vector<128x32xbf16>, vector<32x128xbf16>, vector<128x128xf32> -> vector<128x128xf32>
    %c0_55 = arith.constant 0 : index
    %c512_56 = arith.constant 512 : index
    %258 = vector.load %arg8[%c0_55, %c512_56] : memref<128x768xf32, #tpu.memory_space<vmem>>, vector<64x128xf32>
    %259 = vector.extract_strided_slice %257 {offsets = [0, 0], sizes = [64, 128], strides = [1, 1]} : vector<128x128xf32> to vector<64x128xf32>
    %260 = arith.addf %258, %259 : vector<64x128xf32>
    %c64_57 = arith.constant 64 : index
    %c128_58 = arith.constant 128 : index
    %261 = vector.load %arg8[%c64_57, %c128_58] : memref<128x768xf32, #tpu.memory_space<vmem>>, vector<64x128xf32>
    %262 = vector.extract_strided_slice %257 {offsets = [64, 0], sizes = [64, 128], strides = [1, 1]} : vector<128x128xf32> to vector<64x128xf32>
    %263 = arith.addf %261, %262 : vector<64x128xf32>
    %c4_i32_59 = arith.constant 4 : i32
    %264 = vector.broadcast %c4_i32_59 : i32 to vector<1x128xi32>
    %265 = arith.cmpi sgt, %8, %264 : vector<1x128xi32>
    %266 = vector.extract_strided_slice %260 {offsets = [0, 0], sizes = [48, 128], strides = [1, 1]} : vector<64x128xf32> to vector<48x128xf32>
    %cst_60 = arith.constant 5.000000e-01 : f32
    %267 = vector.broadcast %cst_60 : f32 to vector<48x128xf32>
    %268 = arith.mulf %267, %266 : vector<48x128xf32>
    %269 = math.tanh %268 : vector<48x128xf32>
    %cst_61 = arith.constant 5.000000e-01 : f32
    %270 = vector.broadcast %cst_61 : f32 to vector<48x128xf32>
    %271 = arith.mulf %270, %269 : vector<48x128xf32>
    %cst_62 = arith.constant 5.000000e-01 : f32
    %272 = vector.broadcast %cst_62 : f32 to vector<48x128xf32>
    %273 = arith.addf %271, %272 : vector<48x128xf32>
    %274 = vector.extract_strided_slice %273 {offsets = [0, 0], sizes = [16, 128], strides = [1, 1]} : vector<48x128xf32> to vector<16x128xf32>
    %275 = vector.extract_strided_slice %273 {offsets = [16, 0], sizes = [16, 128], strides = [1, 1]} : vector<48x128xf32> to vector<16x128xf32>
    %276 = vector.extract_strided_slice %273 {offsets = [32, 0], sizes = [16, 128], strides = [1, 1]} : vector<48x128xf32> to vector<16x128xf32>
    %277 = vector.extract_strided_slice %260 {offsets = [48, 0], sizes = [16, 128], strides = [1, 1]} : vector<64x128xf32> to vector<16x128xf32>
    %278 = math.tanh %277 : vector<16x128xf32>
    %279 = arith.mulf %275, %228 : vector<16x128xf32>
    %280 = arith.mulf %274, %278 : vector<16x128xf32>
    %281 = arith.addf %279, %280 : vector<16x128xf32>
    %282 = math.tanh %281 : vector<16x128xf32>
    %283 = arith.mulf %276, %282 : vector<16x128xf32>
    %284 = vector.shape_cast %265 : vector<1x128xi1> to vector<1x128xi1>
    %285 = vector.broadcast %284 : vector<1x128xi1> to vector<16x128xi1>
    %286 = arith.select %285, %283, %225 : vector<16x128xi1>, vector<16x128xf32>
    %287 = vector.shape_cast %265 : vector<1x128xi1> to vector<1x128xi1>
    %288 = vector.broadcast %287 : vector<1x128xi1> to vector<16x128xi1>
    %289 = arith.select %288, %281, %228 : vector<16x128xi1>, vector<16x128xf32>
    %c1_i32_63 = arith.constant 1 : i32
    %290 = vector.broadcast %c1_i32_63 : i32 to vector<1x128xi32>
    %291 = arith.cmpi sgt, %8, %290 : vector<1x128xi32>
    %292 = vector.extract_strided_slice %263 {offsets = [0, 0], sizes = [48, 128], strides = [1, 1]} : vector<64x128xf32> to vector<48x128xf32>
    %cst_64 = arith.constant 5.000000e-01 : f32
    %293 = vector.broadcast %cst_64 : f32 to vector<48x128xf32>
    %294 = arith.mulf %293, %292 : vector<48x128xf32>
    %295 = math.tanh %294 : vector<48x128xf32>
    %cst_65 = arith.constant 5.000000e-01 : f32
    %296 = vector.broadcast %cst_65 : f32 to vector<48x128xf32>
    %297 = arith.mulf %296, %295 : vector<48x128xf32>
    %cst_66 = arith.constant 5.000000e-01 : f32
    %298 = vector.broadcast %cst_66 : f32 to vector<48x128xf32>
    %299 = arith.addf %297, %298 : vector<48x128xf32>
    %300 = vector.extract_strided_slice %299 {offsets = [0, 0], sizes = [16, 128], strides = [1, 1]} : vector<48x128xf32> to vector<16x128xf32>
    %301 = vector.extract_strided_slice %299 {offsets = [16, 0], sizes = [16, 128], strides = [1, 1]} : vector<48x128xf32> to vector<16x128xf32>
    %302 = vector.extract_strided_slice %299 {offsets = [32, 0], sizes = [16, 128], strides = [1, 1]} : vector<48x128xf32> to vector<16x128xf32>
    %303 = vector.extract_strided_slice %263 {offsets = [48, 0], sizes = [16, 128], strides = [1, 1]} : vector<64x128xf32> to vector<16x128xf32>
    %304 = math.tanh %303 : vector<16x128xf32>
    %305 = arith.mulf %301, %254 : vector<16x128xf32>
    %306 = arith.mulf %300, %304 : vector<16x128xf32>
    %307 = arith.addf %305, %306 : vector<16x128xf32>
    %308 = math.tanh %307 : vector<16x128xf32>
    %309 = arith.mulf %302, %308 : vector<16x128xf32>
    %310 = vector.shape_cast %291 : vector<1x128xi1> to vector<1x128xi1>
    %311 = vector.broadcast %310 : vector<1x128xi1> to vector<16x128xi1>
    %312 = arith.select %311, %309, %251 : vector<16x128xi1>, vector<16x128xf32>
    %313 = vector.shape_cast %291 : vector<1x128xi1> to vector<1x128xi1>
    %314 = vector.broadcast %313 : vector<1x128xi1> to vector<16x128xi1>
    %315 = arith.select %314, %307, %254 : vector<16x128xi1>, vector<16x128xf32>
    %316 = tpu.concatenate %286, %312 in 0 : vector<16x128xf32>, vector<16x128xf32> -> vector<32x128xf32>
    %317 = arith.truncf %316 : vector<32x128xf32> to vector<32x128xbf16>
    %cst_67 = arith.constant dense<0.000000e+00> : vector<128x128xf32>
    %318 = tpu.matmul %7, %317, %cst_67 {dimension_numbers = #tpu.dot_dimension_numbers<[1], [0], [0], [1], [0, 0, 1, 1], [], []>} : vector<128x32xbf16>, vector<32x128xbf16>, vector<128x128xf32> -> vector<128x128xf32>
    %c0_68 = arith.constant 0 : index
    %c640_69 = arith.constant 640 : index
    %319 = vector.load %arg8[%c0_68, %c640_69] : memref<128x768xf32, #tpu.memory_space<vmem>>, vector<64x128xf32>
    %320 = vector.extract_strided_slice %318 {offsets = [0, 0], sizes = [64, 128], strides = [1, 1]} : vector<128x128xf32> to vector<64x128xf32>
    %321 = arith.addf %319, %320 : vector<64x128xf32>
    %c64_70 = arith.constant 64 : index
    %c0_71 = arith.constant 0 : index
    %322 = vector.load %arg8[%c64_70, %c0_71] : memref<128x768xf32, #tpu.memory_space<vmem>>, vector<64x128xf32>
    %323 = vector.extract_strided_slice %318 {offsets = [64, 0], sizes = [64, 128], strides = [1, 1]} : vector<128x128xf32> to vector<64x128xf32>
    %324 = arith.addf %322, %323 : vector<64x128xf32>
    %c5_i32_72 = arith.constant 5 : i32
    %325 = vector.broadcast %c5_i32_72 : i32 to vector<1x128xi32>
    %326 = arith.cmpi sgt, %8, %325 : vector<1x128xi32>
    %327 = vector.extract_strided_slice %321 {offsets = [0, 0], sizes = [48, 128], strides = [1, 1]} : vector<64x128xf32> to vector<48x128xf32>
    %cst_73 = arith.constant 5.000000e-01 : f32
    %328 = vector.broadcast %cst_73 : f32 to vector<48x128xf32>
    %329 = arith.mulf %328, %327 : vector<48x128xf32>
    %330 = math.tanh %329 : vector<48x128xf32>
    %cst_74 = arith.constant 5.000000e-01 : f32
    %331 = vector.broadcast %cst_74 : f32 to vector<48x128xf32>
    %332 = arith.mulf %331, %330 : vector<48x128xf32>
    %cst_75 = arith.constant 5.000000e-01 : f32
    %333 = vector.broadcast %cst_75 : f32 to vector<48x128xf32>
    %334 = arith.addf %332, %333 : vector<48x128xf32>
    %335 = vector.extract_strided_slice %334 {offsets = [0, 0], sizes = [16, 128], strides = [1, 1]} : vector<48x128xf32> to vector<16x128xf32>
    %336 = vector.extract_strided_slice %334 {offsets = [16, 0], sizes = [16, 128], strides = [1, 1]} : vector<48x128xf32> to vector<16x128xf32>
    %337 = vector.extract_strided_slice %334 {offsets = [32, 0], sizes = [16, 128], strides = [1, 1]} : vector<48x128xf32> to vector<16x128xf32>
    %338 = vector.extract_strided_slice %321 {offsets = [48, 0], sizes = [16, 128], strides = [1, 1]} : vector<64x128xf32> to vector<16x128xf32>
    %339 = math.tanh %338 : vector<16x128xf32>
    %340 = arith.mulf %336, %289 : vector<16x128xf32>
    %341 = arith.mulf %335, %339 : vector<16x128xf32>
    %342 = arith.addf %340, %341 : vector<16x128xf32>
    %343 = math.tanh %342 : vector<16x128xf32>
    %344 = arith.mulf %337, %343 : vector<16x128xf32>
    %345 = vector.shape_cast %326 : vector<1x128xi1> to vector<1x128xi1>
    %346 = vector.broadcast %345 : vector<1x128xi1> to vector<16x128xi1>
    %347 = arith.select %346, %344, %286 : vector<16x128xi1>, vector<16x128xf32>
    %c0_i32_76 = arith.constant 0 : i32
    %348 = vector.broadcast %c0_i32_76 : i32 to vector<1x128xi32>
    %349 = arith.cmpi sgt, %8, %348 : vector<1x128xi32>
    %350 = vector.extract_strided_slice %324 {offsets = [0, 0], sizes = [48, 128], strides = [1, 1]} : vector<64x128xf32> to vector<48x128xf32>
    %cst_77 = arith.constant 5.000000e-01 : f32
    %351 = vector.broadcast %cst_77 : f32 to vector<48x128xf32>
    %352 = arith.mulf %351, %350 : vector<48x128xf32>
    %353 = math.tanh %352 : vector<48x128xf32>
    %cst_78 = arith.constant 5.000000e-01 : f32
    %354 = vector.broadcast %cst_78 : f32 to vector<48x128xf32>
    %355 = arith.mulf %354, %353 : vector<48x128xf32>
    %cst_79 = arith.constant 5.000000e-01 : f32
    %356 = vector.broadcast %cst_79 : f32 to vector<48x128xf32>
    %357 = arith.addf %355, %356 : vector<48x128xf32>
    %358 = vector.extract_strided_slice %357 {offsets = [0, 0], sizes = [16, 128], strides = [1, 1]} : vector<48x128xf32> to vector<16x128xf32>
    %359 = vector.extract_strided_slice %357 {offsets = [16, 0], sizes = [16, 128], strides = [1, 1]} : vector<48x128xf32> to vector<16x128xf32>
    %360 = vector.extract_strided_slice %357 {offsets = [32, 0], sizes = [16, 128], strides = [1, 1]} : vector<48x128xf32> to vector<16x128xf32>
    %361 = vector.extract_strided_slice %324 {offsets = [48, 0], sizes = [16, 128], strides = [1, 1]} : vector<64x128xf32> to vector<16x128xf32>
    %362 = math.tanh %361 : vector<16x128xf32>
    %363 = arith.mulf %359, %315 : vector<16x128xf32>
    %364 = arith.mulf %358, %362 : vector<16x128xf32>
    %365 = arith.addf %363, %364 : vector<16x128xf32>
    %366 = math.tanh %365 : vector<16x128xf32>
    %367 = arith.mulf %360, %366 : vector<16x128xf32>
    %368 = vector.shape_cast %349 : vector<1x128xi1> to vector<1x128xi1>
    %369 = vector.broadcast %368 : vector<1x128xi1> to vector<16x128xi1>
    %370 = arith.select %369, %367, %312 : vector<16x128xi1>, vector<16x128xf32>
    %371 = vector.broadcast %9 : vector<1x128xf32> to vector<16x128xf32>
    %372 = arith.mulf %347, %371 : vector<16x128xf32>
    %c0_80 = arith.constant 0 : index
    %c0_81 = arith.constant 0 : index
    %373 = vector.load %arg7[%c0_80, %c0_81] : memref<32x128xf32, #tpu.memory_space<vmem>>, vector<16x128xf32>
    tpu.vector_store %arg7[%c0_80, %c0_81], %372 {strides = array<i32>} : memref<32x128xf32, #tpu.memory_space<vmem>>, vector<16x128xf32>,
    %374 = vector.broadcast %9 : vector<1x128xf32> to vector<16x128xf32>
    %375 = arith.mulf %370, %374 : vector<16x128xf32>
    %c16 = arith.constant 16 : index
    %c0_82 = arith.constant 0 : index
    %376 = vector.load %arg7[%c16, %c0_82] : memref<32x128xf32, #tpu.memory_space<vmem>>, vector<16x128xf32>
    tpu.vector_store %arg7[%c16, %c0_82], %375 {strides = array<i32>} : memref<32x128xf32, #tpu.memory_space<vmem>>, vector<16x128xf32>,
    return
  }
  func.func @transform_0(%arg0: i32) -> (i32, i32) {
    %c0_i32 = arith.constant 0 : i32
    %c0_i32_0 = arith.constant 0 : i32
    return %c0_i32, %arg0 : i32, i32
  }
  func.func @transform_1(%arg0: i32) -> (i32, i32) {
    %c0_i32 = arith.constant 0 : i32
    %c0_i32_0 = arith.constant 0 : i32
    return %c0_i32, %arg0 : i32, i32
  }
  func.func @transform_2(%arg0: i32) -> (i32, i32) {
    %c0_i32 = arith.constant 0 : i32
    %c0_i32_0 = arith.constant 0 : i32
    return %c0_i32, %arg0 : i32, i32
  }
  func.func @transform_3(%arg0: i32) -> (i32, i32) {
    %c0_i32 = arith.constant 0 : i32
    %c0_i32_0 = arith.constant 0 : i32
    %c0_i32_1 = arith.constant 0 : i32
    return %c0_i32, %c0_i32_0 : i32, i32
  }
  func.func @transform_4(%arg0: i32) -> (i32, i32) {
    %c0_i32 = arith.constant 0 : i32
    %c0_i32_0 = arith.constant 0 : i32
    %c0_i32_1 = arith.constant 0 : i32
    return %c0_i32, %c0_i32_0 : i32, i32
  }
  func.func @transform_5(%arg0: i32) -> (i32, i32) {
    %c0_i32 = arith.constant 0 : i32
    %c0_i32_0 = arith.constant 0 : i32
    %c0_i32_1 = arith.constant 0 : i32
    return %c0_i32, %c0_i32_0 : i32, i32
  }
  func.func @transform_6(%arg0: i32) -> (i32, i32) {
    %c0_i32 = arith.constant 0 : i32
    %c0_i32_0 = arith.constant 0 : i32
    return %c0_i32, %arg0 : i32, i32
  }
}

</mosaic_0001>

<bundles_post_ra>
// kernel: tpu_custom_call.1
= control target key start
LH: loop header
LB: loop body
LE: loop exit
PB: predicated region body
PF: predicated region fallthrough
CT: control target
= control target key end

     0   :  { %v3769_v2 = vmov 0   ;;  %vm213_vm0 = vcmask 130048   ;;  %v2670_v6 = vmov 0.0|0.0   ;;  %s3762_s0 = inlined_call_operand.vmem [shape: bf16[16,768], index: 0, kind: input, shape index: {}]   ;;  %s3763_s1 = inlined_call_operand.vmem [shape: s32[1,128], index: 1, kind: input, shape index: {}]   ;;  %s3764_s2 = inlined_call_operand.vmem [shape: f32[1,128], index: 2, kind: input, shape index: {}]   ;;  %s3765_s3 = inlined_call_operand.vmem [shape: bf16[128,16], index: 3, kind: input, shape index: {}]   ;;  %s3766_s4 = inlined_call_operand.vmem [shape: f32[128,1], index: 4, kind: input, shape index: {}]   ;;  %s3767_s5 = inlined_call_operand.vmem [shape: bf16[128,32], index: 5, kind: input, shape index: {}]   ;;  %s3768_s6 = inlined_call_operand.hbm [shape: f32[32,128], index: 6, kind: output, shape index: {}]  }
   0x1   :  { %v2374_v0 = vld [vmem:[%s3762_s0 + $0x4] ss:$24 sps:$4 sm:$0xff]   ;;  %270 = vmatprep.mubr.bf16.mxu0 %v3769_v2  ;;  %383 = vmatprep.mubr.bf16.mxu1 %v3769_v2  ;;  %v2378_v3 = vld [vmem:[%s3762_s0] ss:$24 sps:$4 sm:$0xff]   ;;  %v2739_v7 = vld [vmem:[%s3765_s3 + $0x8] sm:$0xff]  }
   0x2   :  { %v2376_v1 = vld [vmem:[%s3762_s0 + $0xc] ss:$24 sps:$4 sm:$0xff]   ;;  %252 = vmatprep.subr.bf16.mxu0 %v2374_v0  ;;  %v2379_v4 = vld [vmem:[%s3762_s0 + $0x8] ss:$24 sps:$4 sm:$0xff]   ;;  %2372 = vset.pattern.permute.xlu0 %v3769_v2  ;;  %v57_v11 = vld [vmem:[%s3766_s4 + $0x50] sm:$0xff] }
   0x3   :  { %365 = vmatprep.subr.bf16.mxu1 %v2376_v1  ;;  %v2727_v5 = vld [vmem:[%s3765_s3] sm:$0xff]   ;;  %2373 = vset.pattern.permute.xlu1 %v3769_v2  ;;  %v2388_v8 = vld [vmem:[%s3762_s0 + $0x10] ss:$24 sps:$4 sm:$0xff]   ;;  %v2390_v9 = vld [vmem:[%s3762_s0 + $0x14] ss:$24 sps:$4 sm:$0xff]  }
   0x4   :  { %253 = vmatpush1.bf16.msra.mxu0 %v2378_v3  ;;  %366 = vmatpush1.bf16.msra.mxu1 %v2379_v4  ;;  %v55_v10 = vld [vmem:[%s3766_s4 + $0x40] sm:$0xff]  ;;  %v56_v12 = vld [vmem:[%s3766_s4 + $0x48] sm:$0xff]  ;;  %v58_v13 = vld [vmem:[%s3766_s4 + $0x58] sm:$0xff] }
   0x5   :  { %2249 = vmatprep.subr.bf16.mxu1 %v2670_v6  ;;  %478 = vmatprep.subr.bf16.mxu0 %v2390_v9  ;;  %v47_v14 = vld [vmem:[%s3766_s4] sm:$0xff]  ;;  %v2771_v15 = vld [vmem:[%s3765_s3 + $0x10] sm:$0xff]   ;;  %v48_v16 = vld [vmem:[%s3766_s4 + $0x8] sm:$0xff] }
   0x6   :  { %105 = vperm.xlu0 %2372, %v55_v10   ;;  %115 = vperm.xlu1 %2373, %v57_v11   ;;  %v49_v17 = vld [vmem:[%s3766_s4 + $0x10] sm:$0xff]  ;;  %v50_v18 = vld [vmem:[%s3766_s4 + $0x18] sm:$0xff] }
   0x7   :  { %2103 = vmatmul.mubr.msk.bf16.vlgmr.msra.gmra.mxu0 %vm213_vm0, %v2727_v5  ;;  %2111 = vmatmul.mubr.msk.bf16.vlgmr.msra.gmra.mxu1 %vm213_vm0, %v2727_v5 }
   0x8   :  { %280 = vmatprep.mubr.bf16.mxu0 %v3769_v2  ;;  %393 = vmatprep.mubr.bf16.mxu1 %v3769_v2 }
   0x9   :  { %2250 = vmatpush3.bf16.msra.mxu1 %v2670_v6  ;;  %479 = vmatpush1.bf16.msra.mxu0 %v2388_v8 }
   0xa   :  { %110 = vperm.xlu0 %2372, %v56_v12   ;;  %120 = vperm.xlu1 %2373, %v58_v13  }
   0xe   :  { %65 = vperm.xlu0 %2372, %v47_v14   ;;  %70 = vperm.xlu1 %2373, %v48_v16  }
   0xf   :  { %2104 = vmatmul.mubr.msk.bf16.gmra.mxu0 %vm213_vm0, %v2739_v7  ;;  %2112 = vmatmul.mubr.msk.bf16.gmra.mxu1 %vm213_vm0, %v2739_v7 }
  0x10   :  { %290 = vmatprep.mubr.bf16.mxu0 %v3769_v2  ;;  %403 = vmatprep.mubr.bf16.mxu1 %v3769_v2 }
  0x12   :  { %75 = vperm.xlu0 %2372, %v49_v17  }
  0x17   :  { %2105 = vmatmul.mubr.msk.bf16.gmra.mxu0 %vm213_vm0, %v2771_v15  ;;  %2113 = vmatmul.mubr.msk.bf16.gmra.mxu1 %vm213_vm0, %v2771_v15 }
  0x18   :  { %300 = vmatprep.mubr.bf16.mxu0 %v3769_v2  ;;  %413 = vmatprep.mubr.bf16.mxu1 %v3769_v2 }
  0x19   :  { %11 = vsyncpa [#allocation4], 0  ;;  %80 = vperm.xlu1 %2373, %v50_v18   ;;  %v61_v19 = vld [vmem:[%s3766_s4 + $0x70] sm:$0xff]  ;;  %v2383_v20 = vld [vmem:[%s3765_s3 + $0x18] sm:$0xff]   ;;  %vm732_vm1 = vcmask 261120  }
  0x1a   :  { %v62_v21 = vld [vmem:[%s3766_s4 + $0x78] sm:$0xff]  ;;  %135 = vperm.xlu0 %2372, %v61_v19   ;;  %v53_v22 = vld [vmem:[%s3766_s4 + $0x30] sm:$0xff]  ;;  %v59_v24 = vld [vmem:[%s3766_s4 + $0x60] sm:$0xff] }
  0x1b   :  { %v54_v23 = vld [vmem:[%s3766_s4 + $0x38] sm:$0xff]  ;;  %v2384_v25 = vld [vmem:[%s3765_s3 + $0x20] sm:$0xff]   ;;  %v60_v26 = vld [vmem:[%s3766_s4 + $0x68] sm:$0xff] }
  0x1c   :  { %v51_v27 = vld [vmem:[%s3766_s4 + $0x20] sm:$0xff]  ;;  %v52_v28 = vld [vmem:[%s3766_s4 + $0x28] sm:$0xff]  ;;  %v2386_v30 = vld [vmem:[%s3765_s3 + $0x30] sm:$0xff]  }
  0x1d   :  { %140 = vperm.xlu1 %2373, %v62_v21   ;;  %v2385_v29 = vld [vmem:[%s3765_s3 + $0x28] sm:$0xff]   ;;  %v2387_v31 = vld [vmem:[%s3765_s3 + $0x38] sm:$0xff]   ;;  %v2846_v32 = vld [vmem:[%s3767_s5] sm:$0xff]  }
  0x1e   :  { %95 = vperm.xlu0 %2372, %v53_v22   ;;  %v2856_v33 = vld [vmem:[%s3767_s5 + $0x8] sm:$0xff]   ;;  %v2861_v34 = vld [vmem:[%s3767_s5 + $0x10] sm:$0xff]   ;;  %v2873_v35 = vld [vmem:[%s3767_s5 + $0x18] sm:$0xff]  }
  0x1f   :  { %2106 = vmatmul.mubr.msk.bf16.gmra.mxu0 %vm213_vm0, %v2383_v20  ;;  %2114 = vmatmul.mubr.msk.bf16.gmra.mxu1 %vm213_vm0, %v2383_v20  ;;  %v2878_v36 = vld [vmem:[%s3767_s5 + $0x20] sm:$0xff]   ;;  %v2890_v37 = vld [vmem:[%s3767_s5 + $0x28] sm:$0xff]   ;;  %v2895_v38 = vld [vmem:[%s3767_s5 + $0x30] sm:$0xff]  }
  0x20   :  { %310 = vmatprep.mubr.bf16.mxu0 %v3769_v2  ;;  %423 = vmatprep.mubr.bf16.mxu1 %v3769_v2  ;;  %v2907_v39 = vld [vmem:[%s3767_s5 + $0x38] sm:$0xff]  }
  0x21   :  { %100 = vperm.xlu1 %2373, %v54_v23  }
  0x22   :  { %125 = vperm.xlu0 %2372, %v59_v24  }
  0x25   :  { %130 = vperm.xlu1 %2373, %v60_v26  }
  0x26   :  { %85 = vperm.xlu0 %2372, %v51_v27  }
  0x27   :  { %2107 = vmatmul.mubr.msk.bf16.gmra.mxu0 %vm213_vm0, %v2384_v25  ;;  %2115 = vmatmul.mubr.msk.bf16.gmra.mxu1 %vm213_vm0, %v2384_v25 }
  0x28   :  { %320 = vmatprep.mubr.bf16.mxu0 %v3769_v2  ;;  %433 = vmatprep.mubr.bf16.mxu1 %v3769_v2 }
  0x29   :  { %90 = vperm.xlu1 %2373, %v52_v28  }
  0x2f   :  { %2108 = vmatmul.mubr.msk.bf16.gmra.mxu0 %vm213_vm0, %v2385_v29  ;;  %2116 = vmatmul.mubr.msk.bf16.gmra.mxu1 %vm213_vm0, %v2385_v29 }
  0x30   :  { %330 = vmatprep.mubr.bf16.mxu0 %v3769_v2  ;;  %443 = vmatprep.mubr.bf16.mxu1 %v3769_v2 }
  0x37   :  { %2109 = vmatmul.mubr.msk.bf16.gmra.mxu0 %vm213_vm0, %v2386_v30  ;;  %2117 = vmatmul.mubr.msk.bf16.gmra.mxu1 %vm213_vm0, %v2386_v30 }
  0x38   :  { %340 = vmatprep.mubr.bf16.mxu0 %v3769_v2  ;;  %453 = vmatprep.mubr.bf16.mxu1 %v3769_v2 }
  0x3f   :  { %2110 = vmatmul.mubr.msk.bf16.gmra.mxu0 %vm213_vm0, %v2387_v31  ;;  %2118 = vmatmul.mubr.msk.bf16.gmra.mxu1 %vm213_vm0, %v2387_v31 }
  0x40   :  { %496 = vmatprep.mubr.bf16.mxu0 %v3769_v2  ;;  %2251 = vmatprep.mubr.msk.bf16.mxu1 %vm732_vm1, %v2846_v32 }
  0x47   :  { %2119 = vmatmul.mubr.msk.bf16.vlgmr.msra.gmra.mxu0 %vm213_vm0, %v2727_v5  ;;  %2252 = vmatmul.mubr.msk.bf16.vlgmr.msra.gmra.mxu1 %vm732_vm1, %v2856_v33 }
  0x48   :  { %506 = vmatprep.mubr.bf16.mxu0 %v3769_v2  ;;  %2255 = vmatprep.mubr.msk.bf16.mxu1 %vm732_vm1, %v2861_v34 }
  0x4f   :  { %2120 = vmatmul.mubr.msk.bf16.gmra.mxu0 %vm213_vm0, %v2739_v7  ;;  %2256 = vmatmul.mubr.msk.bf16.gmra.mxu1 %vm732_vm1, %v2873_v35 }
  0x50   :  { %516 = vmatprep.mubr.bf16.mxu0 %v3769_v2  ;;  %2259 = vmatprep.mubr.msk.bf16.mxu1 %vm732_vm1, %v2878_v36 }
  0x57   :  { %2121 = vmatmul.mubr.msk.bf16.gmra.mxu0 %vm213_vm0, %v2771_v15  ;;  %2260 = vmatmul.mubr.msk.bf16.gmra.mxu1 %vm732_vm1, %v2890_v37 }
  0x58   :  { %526 = vmatprep.mubr.bf16.mxu0 %v3769_v2  ;;  %2263 = vmatprep.mubr.msk.bf16.mxu1 %vm732_vm1, %v2895_v38 }
  0x5f   :  { %2122 = vmatmul.mubr.msk.bf16.gmra.mxu0 %vm213_vm0, %v2383_v20  ;;  %2264 = vmatmul.mubr.msk.bf16.gmra.mxu1 %vm732_vm1, %v2907_v39 }
  0x60   :  { %536 = vmatprep.mubr.bf16.mxu0 %v3769_v2  ;;  %2271 = vmatprep.mubr.msk.bf16.mxu1 %vm732_vm1, %v2846_v32 }
  0x67   :  { %2123 = vmatmul.mubr.msk.bf16.gmra.mxu0 %vm213_vm0, %v2384_v25 }
  0x68   :  { %546 = vmatprep.mubr.bf16.mxu0 %v3769_v2 }
  0x6f   :  { %2124 = vmatmul.mubr.msk.bf16.gmra.mxu0 %vm213_vm0, %v2385_v29 }
  0x70   :  { %556 = vmatprep.mubr.bf16.mxu0 %v3769_v2 }
  0x77   :  { %2125 = vmatmul.mubr.msk.bf16.gmra.mxu0 %vm213_vm0, %v2386_v30 }
  0x78   :  { %566 = vmatprep.mubr.bf16.mxu0 %v3769_v2 }
  0x7f   :  { %2126 = vmatmul.mubr.msk.bf16.gmra.mxu0 %vm213_vm0, %v2387_v31 }
  0x80   :  { %2291 = vmatprep.mubr.msk.bf16.mxu0 %vm732_vm1, %v2846_v32 }
  0x81   :  { %v2988_v9 = vpop.permute.xlu0 %105  ;;  %v2998_v14 = vpop.permute.xlu1 %115 }
  0x85   :  { %v3004_v17 = vpop.permute.xlu0 %110  ;;  %v3014_v22 = vpop.permute.xlu1 %120 }
  0x89   :  { %v3020_v25 = vpop.permute.xlu0 %65  ;;  %v3030_v30 = vpop.permute.xlu1 %70 }
  0xc7   :  { %v2924_v40 = vpop.f32.mrf.mxu0  ;;  %v2926_v41 = vpop.f32.mrf.mxu1 }
  0xc8   :  { %3775 = vst [vmem:[#allocation6_spill] sm:$0xff] %v2926_v41 }
  0xc9   :  { %v2928_v42 = vpop.f32.mrf.mxu0  ;;  %v2930_v43 = vpop.f32.mrf.mxu1 }
  0xca   :  { %3776 = vst [vmem:[#allocation7_spill] sm:$0xff] %v2930_v43 }
  0xcb   :  { %v2932_v44 = vpop.f32.mrf.mxu0  ;;  %v2934_v45 = vpop.f32.mrf.mxu1 }
  0xcc   :  { %3777 = vst [vmem:[#allocation8_spill] sm:$0xff] %v2934_v45 }
  0xcd   :  { %v2936_v46 = vpop.f32.mrf.mxu0  ;;  %v2938_v47 = vpop.f32.mrf.mxu1 }
  0xce   :  { %3778 = vst [vmem:[#allocation9_spill] sm:$0xff] %v2938_v47 }
  0xcf   :  { %v2940_v48 = vpop.f32.mrf.mxu0  ;;  %v2942_v49 = vpop.f32.mrf.mxu1 }
  0xd0   :  { %3779 = vst [vmem:[#allocation10_spill] sm:$0xff] %v2942_v49 }
  0xd1   :  { %v2944_v50 = vpop.f32.mrf.mxu0  ;;  %v2946_v51 = vpop.f32.mrf.mxu1 }
  0xd2   :  { %3780 = vst [vmem:[#allocation11_spill] sm:$0xff] %v2946_v51  ;;  %v277_v51 = vadd.f32 %v2932_v44, %v3030_v30 }
  0xd3   :  { %v2948_v52 = vpop.f32.mrf.mxu0  ;;  %v2950_v53 = vpop.f32.mrf.mxu1 }
  0xd4   :  { %3781 = vst [vmem:[#allocation12_spill] sm:$0xff] %v2950_v53 }
  0xd5   :  { %v2952_v54 = vpop.f32.mrf.mxu0  ;;  %v2954_v55 = vpop.f32.mrf.mxu1 }
  0xd6   :  { %3782 = vst [vmem:[#allocation13_spill] sm:$0xff] %v2954_v55 }
  0xd7   :  { %v2956_v56 = vpop.f32.mrf.mxu0  ;;  %v2958_v57 = vpop.f32.mrf.mxu1 }
  0xd8   :  { %3783 = vst [vmem:[#allocation14_spill] sm:$0xff] %v2958_v57 }
  0xd9   :  { %v2960_v58 = vpop.f32.mrf.mxu0  ;;  %v2962_v59 = vpop.f32.mrf.mxu1 }
  0xda   :  { %3784 = vst [vmem:[#allocation15_spill] sm:$0xff] %v2962_v59 }
  0xdb   :  { %v2964_v60 = vpop.f32.mrf.mxu0  ;;  %v2966_v61 = vpop.f32.mrf.mxu1 }
  0xdc   :  { %3785 = vst [vmem:[#allocation16_spill] sm:$0xff] %v2966_v61 }
  0xdd   :  { %v2968_v62 = vpop.f32.mrf.mxu0  ;;  %v2970_v63 = vpop.f32.mrf.mxu1 }
  0xde   :  { %3786 = vst [vmem:[#allocation17_spill] sm:$0xff] %v2970_v63 }
  0xdf   :  { %v2972_v0 = vpop.f32.mrf.mxu0  ;;  %v2974_v1 = vpop.f32.mrf.mxu1 }
  0xe0   :  { %3787 = vst [vmem:[#allocation18_spill] sm:$0xff] %v2974_v1 }
  0xe1   :  { %v2976_v3 = vpop.f32.mrf.mxu0  ;;  %v2978_v4 = vpop.f32.mrf.mxu1 }
  0xe2   :  { %3788 = vst [vmem:[#allocation19_spill] sm:$0xff] %v2978_v4 }
  0xe3   :  { %v2980_v5 = vpop.f32.mrf.mxu0  ;;  %v2982_v6 = vpop.f32.mrf.mxu1 }
  0xe4   :  { %3789 = vst [vmem:[#allocation20_spill] sm:$0xff] %v2982_v6 }
  0xe5   :  { %v2984_v7 = vpop.f32.mrf.mxu0  ;;  %v2986_v8 = vpop.f32.mrf.mxu1 }
  0xe6   :  { %3790 = vst [vmem:[#allocation21_spill] sm:$0xff] %v2986_v8  ;;  %v273_v8 = vadd.f32 %v2924_v40, %v3020_v25 }
  0xe7   :  { %v2990_v10 = vpop.f32.mrf.mxu0  ;;  %v2992_v11 = vpop.f32.mrf.mxu1 }
  0xe8   :  { %3791 = vst [vmem:[#allocation22_spill] sm:$0xff] %v2990_v10  ;;  %3792 = vst [vmem:[#allocation23_spill] sm:$0xff] %v2992_v11 }
  0xe9   :  { %v2994_v12 = vpop.f32.mrf.mxu0  ;;  %v2996_v13 = vpop.f32.mrf.mxu1 }
  0xea   :  { %3793 = vst [vmem:[#allocation24_spill] sm:$0xff] %v2994_v12  ;;  %3794 = vst [vmem:[#allocation25_spill] sm:$0xff] %v2996_v13  ;;  %v3046_v12 = vpop.permute.xlu1 %80 }
  0xeb   :  { %v3000_v15 = vpop.f32.mrf.mxu0  ;;  %v3002_v16 = vpop.f32.mrf.mxu1 }
  0xec   :  { %3795 = vst [vmem:[#allocation26_spill] sm:$0xff] %v3000_v15  ;;  %3796 = vst [vmem:[#allocation27_spill] sm:$0xff] %v3002_v16  ;;  %v3036_v15 = vpop.permute.xlu0 %75 }
  0xed   :  { %v3006_v18 = vpop.f32.mrf.mxu0  ;;  %v3008_v19 = vpop.f32.mrf.mxu1 }
  0xee   :  { %3797 = vst [vmem:[#allocation28_spill] sm:$0xff] %v3006_v18  ;;  %3798 = vst [vmem:[#allocation29_spill] sm:$0xff] %v3008_v19  ;;  %v3062_v11 = vpop.permute.xlu1 %140 }
  0xef   :  { %v3010_v20 = vpop.f32.mrf.mxu0  ;;  %v3012_v21 = vpop.f32.mrf.mxu1 }
  0xf0   :  { %3799 = vst [vmem:[#allocation30_spill] sm:$0xff] %v3010_v20  ;;  %3800 = vst [vmem:[#allocation31_spill] sm:$0xff] %v3012_v21  ;;  %v3052_v16 = vpop.permute.xlu0 %135 }
  0xf1   :  { %v3016_v23 = vpop.f32.mrf.mxu0  ;;  %v3018_v24 = vpop.f32.mrf.mxu1 }
  0xf2   :  { %3801 = vst [vmem:[#allocation32_spill] sm:$0xff] %v3016_v23  ;;  %3802 = vst [vmem:[#allocation33_spill] sm:$0xff] %v3018_v24  ;;  %v3080_v59 = vpop.permute.xlu1 %100 }
  0xf3   :  { %v3022_v26 = vpop.f32.mrf.mxu0  ;;  %v3024_v27 = vpop.f32.mrf.mxu1 }
  0xf4   :  { %3803 = vst [vmem:[#allocation34_spill] sm:$0xff] %v3022_v26  ;;  %3804 = vst [vmem:[#allocation35_spill] sm:$0xff] %v3024_v27  ;;  %v3068_v21 = vpop.permute.xlu0 %95 }
  0xf5   :  { %v3026_v28 = vpop.f32.mrf.mxu0  ;;  %v3028_v29 = vpop.f32.mrf.mxu1 }
  0xf6   :  { %3805 = vst [vmem:[#allocation36_spill] sm:$0xff] %v3026_v28  ;;  %3806 = vst [vmem:[#allocation37_spill] sm:$0xff] %v3028_v29 }
  0xf7   :  { %v3032_v31 = vpop.f32.mrf.mxu0  ;;  %v3034_v2 = vpop.f32.mrf.mxu1 }
  0xf8   :  { %3807 = vst [vmem:[#allocation38_spill] sm:$0xff] %v3032_v31  ;;  %3808 = vst [vmem:[#allocation39_spill] sm:$0xff] %v3034_v2  ;;  %v3084_v47 = vpop.permute.xlu0 %125 }
  0xf9   :  { %v3038_v10 = vpop.f32.mrf.mxu0  ;;  %v3040_v20 = vpop.f32.mrf.mxu1 }
  0xfa   :  { %3809 = vst [vmem:[#allocation40_spill] sm:$0xff] %v3038_v10  ;;  %3810 = vst [vmem:[#allocation41_spill] sm:$0xff] %v3040_v20 }
  0xfb   :  { %v3042_v18 = vpop.f32.mrf.mxu0  ;;  %v3044_v26 = vpop.f32.mrf.mxu1 }
  0xfc   :  { %3811 = vst [vmem:[#allocation42_spill] sm:$0xff] %v3042_v18  ;;  %3812 = vst [vmem:[#allocation43_spill] sm:$0xff] %v3044_v26 }
  0xfd   :  { %v3048_v28 = vpop.f32.mrf.mxu0  ;;  %v3050_v23 = vpop.f32.mrf.mxu1 }
  0xfe   :  { %3813 = vst [vmem:[#allocation44_spill] sm:$0xff] %v3048_v28  ;;  %3814 = vst [vmem:[#allocation45_spill] sm:$0xff] %v3050_v23 }
  0xff   :  { %v3054_v31 = vpop.f32.mrf.mxu0  ;;  %v3056_v2 = vpop.f32.mrf.mxu1 }
 0x100   :  { %3815 = vst [vmem:[#allocation46_spill] sm:$0xff] %v3054_v31  ;;  %3816 = vst [vmem:[#allocation47_spill] sm:$0xff] %v3056_v2  ;;  %v283_v31 = vadd.f32 %v2940_v48, %v3036_v15 }
 0x101   :  { %v3058_v27 = vpop.f32.mrf.mxu0  ;;  %v3060_v10 = vpop.f32.mrf.mxu1 }
 0x102   :  { %3817 = vst [vmem:[#allocation48_spill] sm:$0xff] %v3058_v27  ;;  %3818 = vst [vmem:[#allocation49_spill] sm:$0xff] %v3060_v10 }
 0x103   :  { %v3064_v18 = vpop.f32.mrf.mxu0  ;;  %v3066_v26 = vpop.f32.mrf.mxu1 }
 0x104   :  { %3819 = vst [vmem:[#allocation50_spill] sm:$0xff] %v3064_v18  ;;  %3820 = vst [vmem:[#allocation51_spill] sm:$0xff] %v3066_v26 }
 0x105   :  { %v3070_v28 = vpop.f32.mrf.mxu0  ;;  %v3072_v63 = vpop.f32.mrf.mxu1 }
 0x106   :  { %3821 = vst [vmem:[#allocation52_spill] sm:$0xff] %v3070_v28  ;;  %3822 = vst [vmem:[#allocation53_spill] sm:$0xff] %v3072_v63  ;;  %v287_v28 = vadd.f32 %v2948_v52, %v3046_v12  ;;  %v303_v63 = vadd.f32 %v2972_v0, %v3068_v21 }
 0x107   :  { %v3076_v2 = vpop.f32.mrf.mxu0  ;;  %v2253_v27 = vpop.f32.mrf.mxu1 }
 0x108   :  { %3823 = vst [vmem:[#allocation54_spill] sm:$0xff] %v3076_v2  ;;  %v864_v18 = vadd.f32 %v2253_v27, %v283_v31 }
 0x109   :  { %v3082_v4 = vpop.f32.mrf.mxu0  ;;  %v791_v26 = vpop.f32.mrf.mxu1 }
 0x10a   :  { %3824 = vst [vmem:[#allocation55_spill] sm:$0xff] %v3082_v4  ;;  %v889_v55 = vmul.f32 0.5, %v864_v18  ;;  %v862_v43 = vadd.f32 %v791_v26, %v273_v8  ;;  %v3094_v4 = vpop.permute.xlu1 %130 }
 0x10b   :  { %v3088_v48 = vpop.f32.mrf.mxu0  ;;  %v2254_v2 = vpop.f32.mrf.mxu1  ;;  %3827 = vst [vmem:[#allocation58_spill] sm:$0xff] %v3094_v4 }
 0x10c   :  { %3825 = vst [vmem:[#allocation56_spill] sm:$0xff] %v3088_v48  ;;  %2399 = vtanh.f32 %v889_v55  ;;  %v887_v40 = vmul.f32 0.5, %v862_v43  ;;  %v865_v23 = vadd.f32 %v2254_v2, %v287_v28  ;;  %v3100_v48 = vpop.permute.xlu0 %85  ;;  %v307_v28 = vadd.f32 %v2980_v5, %v3080_v59 }
 0x10d   :  { %v3092_v27 = vpop.f32.mrf.mxu0  ;;  %v794_v31 = vpop.f32.mrf.mxu1  ;;  %v293_v0 = vadd.f32 %v2956_v56, %v3100_v48 }
 0x10e   :  { %3826 = vst [vmem:[#allocation57_spill] sm:$0xff] %v3092_v27  ;;  %2401 = vtanh.f32 %v887_v40  ;;  %v890_v52 = vmul.f32 0.5, %v865_v23  ;;  %v863_v8 = vadd.f32 %v794_v31, %v277_v51  ;;  %v3110_v40 = vpop.permute.xlu1 %90 }
 0x10f   :  { %v3098_v18 = vpop.f32.mrf.mxu0  ;;  %v2257_v26 = vpop.f32.mrf.mxu1 }
 0x110   :  { %3828 = vst [vmem:[#allocation59_spill] sm:$0xff] %v3098_v18  ;;  %2403 = vtanh.f32 %v890_v52  ;;  %v888_v44 = vmul.f32 0.5, %v863_v8  ;;  %v868_v43 = vadd.f32 %v2257_v26, %v303_v63  ;;  %v297_v26 = vadd.f32 %v2964_v60, %v3110_v40 }
 0x111   :  { %v3102_v2 = vpop.f32.mrf.mxu0  ;;  %v807_v55 = vpop.f32.mrf.mxu1 }
 0x112   :  { %3829 = vst [vmem:[#allocation60_spill] sm:$0xff] %v3102_v2  ;;  %2405 = vtanh.f32 %v888_v44  ;;  %v866_v52 = vadd.f32 %v807_v55, %v293_v0 }
 0x113   :  { %2407 = vtanh.f32 %v868_v43  ;;  %v3108_v51 = vpop.f32.mrf.mxu0  ;;  %v2258_v23 = vpop.f32.mrf.mxu1 }
 0x114   :  { %3830 = vst [vmem:[#allocation61_spill] sm:$0xff] %v3108_v51  ;;  %v869_v31 = vadd.f32 %v2258_v23, %v307_v28  ;;  %v891_v27 = vmul.f32 0.5, %v866_v52 }
 0x115   :  { %v3112_v8 = vpop.f32.mrf.mxu0  ;;  %v810_v63 = vpop.f32.mrf.mxu1 }
 0x116   :  { %3831 = vst [vmem:[#allocation62_spill] sm:$0xff] %v3112_v8  ;;  %2409 = vtanh.f32 %v869_v31  ;;  %v867_v56 = vadd.f32 %v810_v63, %v297_v26 }
 0x117   :  { %v3116_v5 = vpop.f32.mrf.mxu0  ;;  %2411 = vtanh.f32 %v891_v27 }
 0x118   :  { %3832 = vst [vmem:[#allocation63_spill] sm:$0xff] %v3116_v5  ;;  %v892_v23 = vmul.f32 0.5, %v867_v56 }
 0x119   :  { %v2400_v44 = vpop.eup %2399  ;;  %v3118_v43 = vpop.f32.mrf.mxu0 }
 0x11a   :  { %3833 = vst [vmem:[#allocation64_spill] sm:$0xff] %v3118_v43  ;;  %v901_v2 = vmul.f32 0.5, %v2400_v44  ;;  %2413 = vtanh.f32 %v892_v23 }
 0x11b   :  { %v2402_v51 = vpop.eup %2401  ;;  %v3120_v18 = vpop.f32.mrf.mxu0 }
 0x11c   :  { %3834 = vst [vmem:[#allocation65_spill] sm:$0xff] %v3120_v18  ;;  %v899_v28 = vmul.f32 0.5, %v2402_v51  ;;  %v907_v0 = vadd.f32 0.5, %v901_v2 }
 0x11d   :  { %v2404_v55 = vpop.eup %2403  ;;  %v3122_v8 = vpop.f32.mrf.mxu0 }
 0x11e   :  { %3835 = vst [vmem:[#allocation66_spill] sm:$0xff] %v3122_v8  ;;  %v905_v60 = vadd.f32 0.5, %v899_v28  ;;  %v902_v31 = vmul.f32 0.5, %v2404_v55  ;;  %v913_v26 = vmul.f32 0.0, %v907_v0 }
 0x11f   :  { %v2406_v20 = vpop.eup %2405  ;;  %v3124_v5 = vpop.f32.mrf.mxu0 }
 0x120   :  { %3836 = vst [vmem:[#allocation67_spill] sm:$0xff] %v3124_v5  ;;  %v2408_v52 = vpop.eup %2407  ;;  %v900_v63 = vmul.f32 0.5, %v2406_v20  ;;  %v908_v43 = vadd.f32 0.5, %v902_v31 }
 0x121   :  { %v915_v44 = vmul.f32 %v2408_v52, %v905_v60  ;;  %v3126_v10 = vpop.f32.mrf.mxu0  ;;  %v2261_v60 = vpop.f32.mrf.mxu1 }
 0x122   :  { %3837 = vst [vmem:[#allocation68_spill] sm:$0xff] %v3126_v10  ;;  %v906_v51 = vadd.f32 0.5, %v900_v63  ;;  %v914_v56 = vmul.f32 0.0, %v908_v43 }
 0x123   :  { %v3128_v18 = vadd.f32 %v915_v44, %v913_v26  ;;  %v3130_v27 = vpop.f32.mrf.mxu0  ;;  %v2410_v2 = vpop.eup %2409 }
 0x124   :  { %3838 = vst [vmem:[#allocation69_spill] sm:$0xff] %v3130_v27  ;;  %v916_v28 = vmul.f32 %v2410_v2, %v906_v51  ;;  %v2412_v23 = vpop.eup %2411  ;;  %v823_v43 = vpop.f32.mrf.mxu1 }
 0x125   :  { %2415 = vtanh.f32 %v3128_v18  ;;  %v3133_v55 = vpop.f32.mrf.mxu0  ;;  %v903_v52 = vmul.f32 0.5, %v2412_v23 }
 0x126   :  { %3839 = vst [vmem:[#allocation70_spill] sm:$0xff] %v3133_v55  ;;  %v3135_v8 = vadd.f32 %v916_v28, %v914_v56  ;;  %v2262_v5 = vpop.f32.mrf.mxu1 }
 0x127   :  { %v3137_v20 = vpop.f32.mrf.mxu0  ;;  %v2414_v26 = vpop.eup %2413  ;;  %v909_v51 = vadd.f32 0.5, %v903_v52 }
 0x128   :  { %2417 = vtanh.f32 %v3135_v8  ;;  %v904_v2 = vmul.f32 0.5, %v2414_v26  ;;  %v826_v57 = vpop.f32.mrf.mxu1 }
 0x129   :  { %v540_v0 = vpop.f32.mrf.mxu0 }
 0x12a   :  { %v541_v28 = vadd.f32 %v540_v0, %v2988_v9  ;;  %v910_v23 = vadd.f32 0.5, %v904_v2 }
 0x12b   :  { %v3140_v31 = vpop.f32.mrf.mxu0 }
 0x12c   :  { %v878_v61 = vadd.f32 %v823_v43, %v541_v28  ;;  %v2265_v43 = vpop.f32.mrf.mxu1 }
 0x12d   :  { %v544_v63 = vpop.f32.mrf.mxu0 }
 0x12e   :  { %v545_v6 = vadd.f32 %v544_v63, %v3004_v17 }
 0x12f   :  { %v3142_v44 = vpop.f32.mrf.mxu0 }
 0x131   :  { %v550_v55 = vpop.f32.mrf.mxu0 }
 0x132   :  { %v2416_v56 = vpop.eup %2415  ;;  %v551_v10 = vadd.f32 %v550_v55, %v2998_v14 }
 0x133   :  { %v3146_v27 = vmul.f32 %v2416_v56, %v909_v51  ;;  %v3148_v19 = vpop.f32.mrf.mxu0 }
 0x134   :  { %v880_v29 = vadd.f32 %v2261_v60, %v551_v10  ;;  %v934_v10 = vmul.f32 0.5, %v878_v61  ;;  %v879_v60 = vadd.f32 %v826_v57, %v545_v6 }
 0x135   :  { %3840 = vst [vmem:[#allocation71_spill] sm:$0xff] %v3146_v27  ;;  %v554_v13 = vpop.f32.mrf.mxu0  ;;  %v2418_v24 = vpop.eup %2417 }
 0x136   :  { %v555_v52 = vadd.f32 %v554_v13, %v3014_v22  ;;  %v3152_v26 = vmul.f32 %v2418_v24, %v910_v23  ;;  %v936_v55 = vmul.f32 0.5, %v880_v29  ;;  %v935_v24 = vmul.f32 0.5, %v879_v60  ;;  %v839_v29 = vpop.f32.mrf.mxu1 }
 0x137   :  { %v3154_v0 = vpop.f32.mrf.mxu0 }
 0x138   :  { %3841 = vst [vmem:[#allocation72_spill] sm:$0xff] %v3152_v26  ;;  %v881_v51 = vadd.f32 %v2262_v5, %v555_v52  ;;  %v3158_v1 = vpack.c.bf16 %v3152_v26, %v3146_v27  ;;  %2419 = vtanh.f32 %v936_v55  ;;  %v2266_v57 = vpop.f32.mrf.mxu1 }
 0x139   :  { %v560_v56 = vpop.f32.mrf.mxu0  ;;  %2421 = vtanh.f32 %v934_v10 }
 0x13a   :  { %v937_v63 = vmul.f32 0.5, %v881_v51  ;;  %v561_v51 = vadd.f32 %v560_v56, %v3084_v47 }
 0x13b   :  { %v3160_v2 = vpop.f32.mrf.mxu0 }
 0x13c   :  { %3842 = vst [vmem:[#allocation73_spill] sm:$0xff] %v3160_v2  ;;  %2423 = vtanh.f32 %v937_v63  ;;  %v842_v63 = vpop.f32.mrf.mxu1 }
 0x13d   :  { %v564_v13 = vpop.f32.mrf.mxu0  ;;  %2425 = vtanh.f32 %v935_v24  ;;  %v882_v24 = vadd.f32 %v839_v29, %v561_v51 }
 0x13e   :  { %v565_v10 = vadd.f32 %v564_v13, %v3094_v4 }
 0x13f   :  { %v3162_v28 = vpop.f32.mrf.mxu0 }
 0x141   :  { %v570_v5 = vpop.f32.mrf.mxu0 }
 0x142   :  { %v571_v23 = vadd.f32 %v570_v5, %v3052_v16  ;;  %v883_v5 = vadd.f32 %v842_v63, %v565_v10 }
 0x143   :  { %v3165_v52 = vpop.f32.mrf.mxu0 }
 0x144   :  { %3843 = vst [vmem:[#allocation74_spill] sm:$0xff] %v3165_v52  ;;  %v884_v61 = vadd.f32 %v2265_v43, %v571_v23  ;;  %v938_v23 = vmul.f32 0.5, %v882_v24  ;;  %v939_v2 = vmul.f32 0.5, %v883_v5 }
 0x145   :  { %v574_v6 = vpop.f32.mrf.mxu0  ;;  %v2420_v45 = vpop.eup %2419 }
 0x146   :  { %2427 = vtanh.f32 %v884_v61  ;;  %v575_v55 = vadd.f32 %v574_v6, %v3062_v11  ;;  %v2422_v53 = vpop.eup %2421  ;;  %v948_v41 = vmul.f32 0.5, %v2420_v45 }
 0x147   :  { %v946_v26 = vmul.f32 0.5, %v2422_v53 }
 0x148   :  { %v885_v60 = vadd.f32 %v2266_v57, %v575_v55  ;;  %v954_v27 = vadd.f32 0.5, %v948_v41  ;;  %v924_v41 = vlaneseq }
 0x149   :  { %v2424_v49 = vpop.eup %2423  ;;  %v952_v6 = vadd.f32 0.5, %v946_v26 }
 0x14a   :  { %2429 = vtanh.f32 %v885_v60  ;;  %v2426_v43 = vpop.eup %2425  ;;  %v949_v61 = vmul.f32 0.5, %v2424_v49  ;;  %v960_v13 = vmul.f32 0.0, %v954_v27  ;;  %v3179_v49 = vld [vmem:[%s3763_s1] sm:$0x1]  ;;  %v925_v26 = vshrl.u32 %v924_v41, 7 }
 0x14b   :  { %v947_v52 = vmul.f32 0.5, %v2426_v43  ;;  %2431 = vtanh.f32 %v938_v23  ;;  %vm933_vm2 = vcmp.gt.s32.totalorder %v3179_v49, 5  ;;  %vm886_vm3 = vcmp.gt.s32.totalorder %v3179_v49, 0 }
 0x14c   :  { %v955_v57 = vadd.f32 0.5, %v949_v61  ;;  %2433 = vtanh.f32 %v939_v2  ;;  %v3184_v5 = vsub.s32 0, %v925_v26  ;;  %vm1111_vm8 = vcmp.gt.s32.totalorder %v3179_v49, 1 }
 0x14d   :  { %v953_v60 = vadd.f32 0.5, %v947_v52  ;;  %v3844_v52 = vmov 0   ;;  %vm1158_vm10 = vcmp.gt.s32.totalorder %v3179_v49, 4  ;;  %vm1336_vm12 = vcmp.gt.s32.totalorder %v3179_v49, 2 }
 0x14e   :  { %v961_v29 = vmul.f32 0.0, %v955_v57  ;;  %v970_v10 = vsel %vm933_vm2, 1, %v3844_v52  ;;  %v923_v43 = vsel %vm886_vm3, 1, %v3844_v52  ;;  %vm1383_vm14 = vcmp.gt.s32.totalorder %v3179_v49, 3 }
 0x14f   :  { %v974_v23 = vrot.slane %v970_v10, %v3184_v5  ;;  %v289_v10 = vadd.f32 %v2952_v54, %v3046_v12 }
 0x151   :  { %vm3193_vm4 = vcmp.eq.s32.totalorder %v974_v23, 1  ;;  %v279_v23 = vadd.f32 %v2936_v46, %v3030_v30  ;;  %v309_v46 = vadd.f32 %v2984_v7, %v3080_v59  ;;  %v539_v7 = vadd.f32 %v3137_v20, %v2988_v9 }
 0x152   :  { %vm2143_vm5 = vmpackc.low %vm3193_vm4, %vm3193_vm4 }
 0x153   :  { %v2428_v56 = vpop.eup %2427 }
 0x154   :  { %v962_v55 = vmul.f32 %v2428_v56, %v952_v6 }
 0x156   :  { %v3170_v4 = vadd.f32 %v962_v55, %v960_v13  ;;  %v927_v13 = vrot.slane %v923_v43, %v3184_v5 }
 0x157   :  { %v2430_v45 = vpop.eup %2429 }
 0x158   :  { %v963_v51 = vmul.f32 %v2430_v45, %v953_v60  ;;  %2435 = vtanh.f32 %v3170_v4  ;;  %v2432_v27 = vpop.eup %2431  ;;  %vm3202_vm6 = vcmp.eq.s32.totalorder %v927_v13, 1 }
 0x159   :  { %v2434_v2 = vpop.eup %2433  ;;  %v950_v63 = vmul.f32 0.5, %v2432_v27  ;;  %vm2146_vm7 = vmpackc.low %vm3202_vm6, %vm3202_vm6  ;;  %v275_v27 = vadd.f32 %v2928_v42, %v3020_v25 }
 0x15a   :  { %v3173_v53 = vadd.f32 %v963_v51, %v961_v29  ;;  %v951_v24 = vmul.f32 0.5, %v2434_v2 }
 0x15b   :  { %v956_v6 = vadd.f32 0.5, %v950_v63 }
 0x15c   :  { %2437 = vtanh.f32 %v3173_v53  ;;  %v957_v56 = vadd.f32 0.5, %v951_v24 }
 0x165   :  { %v2436_v61 = vpop.eup %2435 }
 0x166   :  { %v3189_v55 = vmul.f32 %v2436_v61, %v956_v6 }
 0x169   :  { %v2438_v57 = vpop.eup %2437 }
 0x16a   :  { %v3191_v60 = vmul.f32 %v2438_v57, %v957_v56 }
 0x16c   :  { %v2144_v29 = vpack.c.bf16 %v3191_v60, %v3189_v55 }
 0x16e   :  { %2267 = vmatprep.subr.msk.bf16.mxu1 %vm2143_vm5, %v2144_v29 }
 0x16f   :  { %2268 = vmatpush3.bf16.msk.msra.mxu1 %vm2143_vm5, %v2144_v29 }
 0x170   :  { %2269 = vmatprep.subr.msk.bf16.mxu1 %vm2146_vm7, %v3158_v1 }
 0x173   :  { %2270 = vmatpush3.bf16.msk.msra.mxu1 %vm2146_vm7, %v3158_v1  ;;  %v285_v1 = vadd.f32 %v2944_v50, %v3036_v15  ;;  %v305_v50 = vadd.f32 %v2976_v3, %v3068_v21  ;;  %v299_v3 = vadd.f32 %v2968_v62, %v3110_v40  ;;  %v1148_v62 = vsel %vm1111_vm8, 1, %v3844_v52 }
 0x176   :  { %2272 = vmatmul.mubr.msk.bf16.vlgmr.msra.gmra.mxu1 %vm732_vm1, %v2856_v33 }
 0x177   :  { %2275 = vmatprep.mubr.msk.bf16.mxu1 %vm732_vm1, %v2861_v34 }
 0x17e   :  { %2276 = vmatmul.mubr.msk.bf16.gmra.mxu1 %vm732_vm1, %v2873_v35 }
 0x17f   :  { %2279 = vmatprep.mubr.msk.bf16.mxu1 %vm732_vm1, %v2878_v36 }
 0x186   :  { %2280 = vmatmul.mubr.msk.bf16.gmra.mxu1 %vm732_vm1, %v2890_v37 }
 0x187   :  { %2283 = vmatprep.mubr.msk.bf16.mxu1 %vm732_vm1, %v2895_v38 }
 0x18e   :  { %2284 = vmatmul.mubr.msk.bf16.gmra.mxu1 %vm732_vm1, %v2907_v39 }
 0x18f   :  { %2311 = vmatprep.mubr.msk.bf16.mxu1 %vm732_vm1, %v2846_v32 }
 0x236   :  { %v2273_v41 = vpop.f32.mrf.mxu1 }
 0x237   :  { %v1089_v26 = vadd.f32 %v2273_v41, %v285_v1  ;;  %v295_v1 = vadd.f32 %v2960_v58, %v3100_v48 }
 0x238   :  { %v1016_v2 = vpop.f32.mrf.mxu1 }
 0x239   :  { %v1114_v63 = vmul.f32 0.5, %v1089_v26  ;;  %v1087_v24 = vadd.f32 %v1016_v2, %v275_v27 }
 0x23a   :  { %v2274_v43 = vpop.f32.mrf.mxu1 }
 0x23b   :  { %2439 = vtanh.f32 %v1114_v63  ;;  %v1112_v61 = vmul.f32 0.5, %v1087_v24  ;;  %v1090_v6 = vadd.f32 %v2274_v43, %v289_v10  ;;  %v549_v63 = vadd.f32 %v3142_v44, %v2998_v14 }
 0x23c   :  { %v1019_v56 = vpop.f32.mrf.mxu1  ;;  %v553_v44 = vadd.f32 %v3148_v19, %v3014_v22 }
 0x23d   :  { %2441 = vtanh.f32 %v1112_v61  ;;  %v1115_v42 = vmul.f32 0.5, %v1090_v6  ;;  %v1088_v13 = vadd.f32 %v1019_v56, %v279_v23 }
 0x23e   :  { %v2277_v57 = vpop.f32.mrf.mxu1 }
 0x23f   :  { %2443 = vtanh.f32 %v1115_v42  ;;  %v1113_v29 = vmul.f32 0.5, %v1088_v13  ;;  %v1093_v54 = vadd.f32 %v2277_v57, %v305_v50  ;;  %v931_v57 = vsel %vm3202_vm6, %v3128_v18, 0.0 }
 0x240   :  { %v1032_v41 = vpop.f32.mrf.mxu1 }
 0x241   :  { %2445 = vtanh.f32 %v1113_v29  ;;  %v1091_v27 = vadd.f32 %v1032_v41, %v295_v1 }
 0x242   :  { %2447 = vtanh.f32 %v1093_v54  ;;  %v2278_v26 = vpop.f32.mrf.mxu1 }
 0x243   :  { %v1094_v2 = vadd.f32 %v2278_v26, %v309_v46  ;;  %v1116_v24 = vmul.f32 0.5, %v1091_v27  ;;  %v543_v27 = vadd.f32 %v3140_v31, %v3004_v17  ;;  %v569_v26 = vadd.f32 %v3162_v28, %v3052_v16 }
 0x244   :  { %v1035_v10 = vpop.f32.mrf.mxu1 }
 0x245   :  { %2449 = vtanh.f32 %v1094_v2  ;;  %v1092_v43 = vadd.f32 %v1035_v10, %v299_v3  ;;  %v1152_v3 = vrot.slane %v1148_v62, %v3184_v5 }
 0x246   :  { %v2281_v58 = vpop.f32.mrf.mxu1  ;;  %2451 = vtanh.f32 %v1116_v24 }
 0x247   :  { %v1105_v23 = vadd.f32 %v2281_v58, %v549_v63  ;;  %v1117_v29 = vmul.f32 0.5, %v1092_v43  ;;  %v559_v43 = vadd.f32 %v3154_v0, %v3084_v47  ;;  %v932_v58 = vsel %vm3202_vm6, %v3135_v8, 0.0 }
 0x248   :  { %v2440_v61 = vpop.eup %2439  ;;  %v1048_v6 = vpop.f32.mrf.mxu1  ;;  %vm3266_vm9 = vcmp.eq.s32.totalorder %v1152_v3, 1  ;;  %v3853_v3 = vld [vmem:[#allocation73_spill] sm:$0xff] }
 0x249   :  { %v1126_v56 = vmul.f32 0.5, %v2440_v61  ;;  %v1161_v50 = vmul.f32 0.5, %v1105_v23  ;;  %v1103_v42 = vadd.f32 %v1048_v6, %v539_v7 }
 0x24a   :  { %v2442_v13 = vpop.eup %2441  ;;  %v2282_v54 = vpop.f32.mrf.mxu1 }
 0x24b   :  { %v1132_v20 = vadd.f32 0.5, %v1126_v56  ;;  %v1124_v1 = vmul.f32 0.5, %v2442_v13  ;;  %2453 = vtanh.f32 %v1161_v50  ;;  %v1159_v41 = vmul.f32 0.5, %v1103_v42  ;;  %v3849_v50 = vld [vmem:[#allocation74_spill] sm:$0xff] }
 0x24c   :  { %v2444_v46 = vpop.eup %2443  ;;  %v1106_v2 = vadd.f32 %v2282_v54, %v553_v44  ;;  %v1051_v19 = vpop.f32.mrf.mxu1  ;;  %v573_v42 = vadd.f32 %v3849_v50, %v3062_v11 }
 0x24d   :  { %v1138_v10 = vmul.f32 %v1132_v20, %v931_v57  ;;  %v1130_v18 = vadd.f32 0.5, %v1124_v1  ;;  %v1127_v63 = vmul.f32 0.5, %v2444_v46  ;;  %2455 = vtanh.f32 %v1159_v41 }
 0x24e   :  { %v2446_v24 = vpop.eup %2445  ;;  %v1162_v31 = vmul.f32 0.5, %v1106_v2  ;;  %v1104_v7 = vadd.f32 %v1051_v19, %v543_v27  ;;  %v2285_v23 = vpop.f32.mrf.mxu1  ;;  %2457 = vtanh.f32 %v1117_v29  ;;  %v3852_v19 = vld [vmem:[#allocation58_spill] sm:$0xff] }
 0x24f   :  { %v2448_v28 = vpop.eup %2447  ;;  %v1133_v61 = vadd.f32 0.5, %v1127_v63  ;;  %v1125_v6 = vmul.f32 0.5, %v2446_v24  ;;  %v1109_v56 = vadd.f32 %v2285_v23, %v569_v26 }
 0x250   :  { %v1140_v62 = vmul.f32 %v2448_v28, %v1130_v18  ;;  %2459 = vtanh.f32 %v1162_v31  ;;  %v1160_v13 = vmul.f32 0.5, %v1104_v7  ;;  %v1064_v44 = vpop.f32.mrf.mxu1  ;;  %v563_v18 = vadd.f32 %v3853_v3, %v3852_v19 }
 0x251   :  { %v1139_v0 = vmul.f32 %v1133_v61, %v932_v58  ;;  %v1131_v54 = vadd.f32 0.5, %v1125_v6  ;;  %2461 = vtanh.f32 %v1109_v56  ;;  %v1107_v29 = vadd.f32 %v1064_v44, %v559_v43 }
 0x252   :  { %v1142_v20 = vadd.f32 %v1140_v62, %v1138_v10  ;;  %2463 = vtanh.f32 %v1160_v13  ;;  %v2286_v1 = vpop.f32.mrf.mxu1  ;;  %v2450_v41 = vpop.eup %2449  ;;  %v1195_v31 = vsel %vm1158_vm10, 1, %v3844_v52  ;;  %v978_v62 = vsel %vm3193_vm4, %v3170_v4, 0.0 }
 0x253   :  { %v1110_v46 = vadd.f32 %v2286_v1, %v573_v42  ;;  %v1141_v27 = vmul.f32 %v2450_v41, %v1131_v54  ;;  %v2452_v10 = vpop.eup %2451  ;;  %v1163_v24 = vmul.f32 0.5, %v1107_v29  ;;  %v1199_v61 = vrot.slane %v1195_v31, %v3184_v5 }
 0x254   :  { %2465 = vtanh.f32 %v1142_v20  ;;  %v3273_v26 = vsel %vm3266_vm9, %v1142_v20, %v931_v57  ;;  %v1067_v2 = vpop.f32.mrf.mxu1  ;;  %v1128_v6 = vmul.f32 0.5, %v2452_v10  ;;  %v979_v4 = vsel %vm3193_vm4, %v3173_v53, 0.0 }
 0x255   :  { %v1143_v63 = vadd.f32 %v1141_v27, %v1139_v0  ;;  %2467 = vtanh.f32 %v1110_v46  ;;  %v1108_v7 = vadd.f32 %v1067_v2, %v563_v18  ;;  %vm3286_vm11 = vcmp.eq.s32.totalorder %v1199_v61, 1 }
 0x256   :  { %v1134_v41 = vadd.f32 0.5, %v1128_v6 }
 0x257   :  { %2469 = vtanh.f32 %v1143_v63  ;;  %v3280_v23 = vsel %vm3266_vm9, %v1143_v63, %v932_v58  ;;  %v1164_v13 = vmul.f32 0.5, %v1108_v7  ;;  %v3856_v7 = vld [vmem:[#allocation71_spill] sm:$0xff] }
 0x258   :  { %v2454_v43 = vpop.eup %2453  ;;  %2471 = vtanh.f32 %v1163_v24 }
 0x259   :  { %v1173_v28 = vmul.f32 0.5, %v2454_v43  ;;  %2473 = vtanh.f32 %v1164_v13  ;;  %v3857_v13 = vld [vmem:[#allocation72_spill] sm:$0xff] }
 0x25a   :  { %v2456_v57 = vpop.eup %2455 }
 0x25b   :  { %v1179_v56 = vadd.f32 0.5, %v1173_v28  ;;  %v1171_v50 = vmul.f32 0.5, %v2456_v57  ;;  %v2458_v42 = vpop.eup %2457  ;;  %v929_v28 = vsel %vm3202_vm6, %v3856_v7, 0.0 }
 0x25c   :  { %v1129_v27 = vmul.f32 0.5, %v2458_v42 }
 0x25d   :  { %v2460_v44 = vpop.eup %2459  ;;  %v1185_v0 = vmul.f32 %v1179_v56, %v978_v62  ;;  %v1177_v54 = vadd.f32 0.5, %v1171_v50 }
 0x25e   :  { %v2462_v20 = vpop.eup %2461  ;;  %v1174_v58 = vmul.f32 0.5, %v2460_v44  ;;  %v1135_v61 = vadd.f32 0.5, %v1129_v27  ;;  %v930_v44 = vsel %vm3202_vm6, %v3857_v13, 0.0  ;;  %v3862_v13 = vld [vmem:[#allocation18_spill] sm:$0xff] }
 0x25f   :  { %v2464_v1 = vpop.eup %2463  ;;  %v1187_v29 = vmul.f32 %v2462_v20, %v1177_v54 }
 0x260   :  { %v1180_v2 = vadd.f32 0.5, %v1174_v58  ;;  %v1172_v3 = vmul.f32 0.5, %v2464_v1 }
 0x261   :  { %v2466_v18 = vpop.eup %2465  ;;  %v1189_v63 = vadd.f32 %v1187_v29, %v1185_v0 }
 0x262   :  { %v1146_v10 = vmul.f32 %v2466_v18, %v1134_v41  ;;  %v1186_v24 = vmul.f32 %v1180_v2, %v979_v4  ;;  %v1178_v31 = vadd.f32 0.5, %v1172_v3  ;;  %v2468_v43 = vpop.eup %2467  ;;  %v976_v2 = vsel %vm3193_vm4, %v3189_v55, 0.0 }
 0x263   :  { %2475 = vtanh.f32 %v1189_v63  ;;  %v3298_v57 = vsel %vm3286_vm11, %v1189_v63, %v978_v62 }
 0x264   :  { %v1188_v6 = vmul.f32 %v2468_v43, %v1178_v31  ;;  %v3302_v56 = vsel %vm3266_vm9, %v1146_v10, %v929_v28  ;;  %v2470_v53 = vpop.eup %2469 }
 0x265   :  { %v1147_v50 = vmul.f32 %v2470_v53, %v1135_v61  ;;  %v2472_v0 = vpop.eup %2471 }
 0x266   :  { %v1190_v42 = vadd.f32 %v1188_v6, %v1186_v24  ;;  %v1175_v20 = vmul.f32 0.5, %v2472_v0  ;;  %v2474_v58 = vpop.eup %2473 }
 0x267   :  { %v3309_v54 = vsel %vm3266_vm9, %v1147_v50, %v930_v44  ;;  %v1176_v29 = vmul.f32 0.5, %v2474_v58  ;;  %v416_v44 = vadd.f32 %v3862_v13, %v3068_v21  ;;  %v3868_v13 = vld [vmem:[#allocation37_spill] sm:$0xff] }
 0x268   :  { %2477 = vtanh.f32 %v1190_v42  ;;  %v3313_v62 = vsel %vm3286_vm11, %v1190_v42, %v979_v4  ;;  %v1181_v1 = vadd.f32 0.5, %v1175_v20  ;;  %v977_v4 = vsel %vm3193_vm4, %v3191_v60, 0.0 }
 0x269   :  { %v1182_v18 = vadd.f32 0.5, %v1176_v29  ;;  %v1205_v55 = vpack.c.bf16 %v3309_v54, %v3302_v56  ;;  %v3863_v29 = vld [vmem:[#allocation14_spill] sm:$0xff] }
 0x270   :  { %v2476_v41 = vpop.eup %2475 }
 0x271   :  { %v1193_v27 = vmul.f32 %v2476_v41, %v1181_v1 }
 0x273   :  { %v3320_v3 = vsel %vm3286_vm11, %v1193_v27, %v976_v2  ;;  %v406_v27 = vadd.f32 %v3863_v29, %v3100_v48 }
 0x275   :  { %v2478_v63 = vpop.eup %2477 }
 0x276   :  { %v1194_v10 = vmul.f32 %v2478_v63, %v1182_v18  ;;  %v3864_v18 = vld [vmem:[#allocation20_spill] sm:$0xff] }
 0x277   :  { %v420_v63 = vadd.f32 %v3864_v18, %v3080_v59  ;;  %v3870_v18 = vld [vmem:[#allocation49_spill] sm:$0xff] }
 0x278   :  { %v3327_v24 = vsel %vm3286_vm11, %v1194_v10, %v977_v4 }
 0x279   :  { %v1206_v31 = vpack.c.bf16 %v3327_v24, %v3320_v3 }
 0x27b   :  { %2287 = vmatprep.subr.bf16.mxu0 %v1206_v31 }
 0x27c   :  { %2288 = vmatpush3.bf16.msra.mxu0 %v1206_v31 }
 0x27d   :  { %2289 = vmatprep.subr.bf16.mxu0 %v1205_v55 }
 0x280   :  { %2290 = vmatpush3.bf16.msra.mxu0 %v1205_v55  ;;  %v3865_v55 = vld [vmem:[#allocation16_spill] sm:$0xff] }
 0x283   :  { %2292 = vmatmul.mubr.msk.bf16.vlgmr.msra.gmra.mxu0 %vm732_vm1, %v2856_v33  ;;  %v3858_v33 = vld [vmem:[#allocation10_spill] sm:$0xff] }
 0x284   :  { %2295 = vmatprep.mubr.msk.bf16.mxu0 %vm732_vm1, %v2861_v34  ;;  %v396_v34 = vadd.f32 %v3858_v33, %v3036_v15  ;;  %v410_v33 = vadd.f32 %v3865_v55, %v3110_v40 }
 0x28b   :  { %2296 = vmatmul.mubr.msk.bf16.gmra.mxu0 %vm732_vm1, %v2873_v35  ;;  %v3859_v35 = vld [vmem:[#allocation6_spill] sm:$0xff] }
 0x28c   :  { %2299 = vmatprep.mubr.msk.bf16.mxu0 %vm732_vm1, %v2878_v36  ;;  %v386_v43 = vadd.f32 %v3859_v35, %v3020_v25 }
 0x293   :  { %2300 = vmatmul.mubr.msk.bf16.gmra.mxu0 %vm732_vm1, %v2890_v37  ;;  %v3860_v37 = vld [vmem:[#allocation12_spill] sm:$0xff] }
 0x294   :  { %2303 = vmatprep.mubr.msk.bf16.mxu0 %vm732_vm1, %v2895_v38  ;;  %v400_v28 = vadd.f32 %v3860_v37, %v3046_v12  ;;  %v3867_v37 = vld [vmem:[#allocation25_spill] sm:$0xff] }
 0x29b   :  { %2304 = vmatmul.mubr.msk.bf16.gmra.mxu0 %vm732_vm1, %v2907_v39  ;;  %v3861_v39 = vld [vmem:[#allocation8_spill] sm:$0xff] }
 0x29c   :  { %2331 = vmatprep.mubr.msk.bf16.mxu0 %vm732_vm1, %v2846_v32  ;;  %v390_v53 = vadd.f32 %v3861_v39, %v3030_v30 }
 0x343   :  { %v2293_v60 = vpop.f32.mrf.mxu0 }
 0x344   :  { %v1314_v36 = vadd.f32 %v2293_v60, %v396_v34  ;;  %v3866_v60 = vld [vmem:[#allocation33_spill] sm:$0xff] }
 0x345   :  { %v1241_v7 = vpop.f32.mrf.mxu0  ;;  %v438_v35 = vadd.f32 %v3866_v60, %v2998_v14 }
 0x346   :  { %v1339_v61 = vmul.f32 0.5, %v1314_v36  ;;  %v1312_v38 = vadd.f32 %v1241_v7, %v386_v43 }
 0x347   :  { %v2294_v6 = vpop.f32.mrf.mxu0 }
 0x348   :  { %2479 = vtanh.f32 %v1339_v61  ;;  %v1337_v32 = vmul.f32 0.5, %v1312_v38  ;;  %v1315_v50 = vadd.f32 %v2294_v6, %v400_v28  ;;  %v428_v28 = vadd.f32 %v3867_v37, %v2988_v9 }
 0x349   :  { %v1244_v42 = vpop.f32.mrf.mxu0 }
 0x34a   :  { %2481 = vtanh.f32 %v1337_v32  ;;  %v1340_v0 = vmul.f32 0.5, %v1315_v50  ;;  %v1313_v20 = vadd.f32 %v1244_v42, %v390_v53  ;;  %v1373_v50 = vsel %vm1336_vm12, 1, %v3844_v52 }
 0x34b   :  { %v2297_v58 = vpop.f32.mrf.mxu0 }
 0x34c   :  { %2483 = vtanh.f32 %v1340_v0  ;;  %v1338_v1 = vmul.f32 0.5, %v1313_v20  ;;  %v1318_v41 = vadd.f32 %v2297_v58, %v416_v44  ;;  %v442_v44 = vadd.f32 %v3868_v13, %v3014_v22 }
 0x34d   :  { %v1257_v2 = vpop.f32.mrf.mxu0 }
 0x34e   :  { %2485 = vtanh.f32 %v1338_v1  ;;  %v1316_v10 = vadd.f32 %v1257_v2, %v406_v27  ;;  %v3869_v27 = vld [vmem:[#allocation29_spill] sm:$0xff] }
 0x34f   :  { %2487 = vtanh.f32 %v1318_v41  ;;  %v2298_v4 = vpop.f32.mrf.mxu0  ;;  %v432_v2 = vadd.f32 %v3869_v27, %v3004_v17 }
 0x350   :  { %v1319_v31 = vadd.f32 %v2298_v4, %v420_v63  ;;  %v1341_v43 = vmul.f32 0.5, %v1316_v10  ;;  %v458_v63 = vadd.f32 %v3870_v18, %v3052_v16 }
 0x351   :  { %v1260_v34 = vpop.f32.mrf.mxu0 }
 0x352   :  { %2489 = vtanh.f32 %v1319_v31  ;;  %v1317_v36 = vadd.f32 %v1260_v34, %v410_v33  ;;  %v1377_v31 = vrot.slane %v1373_v50, %v3184_v5 }
 0x353   :  { %v2301_v7 = vpop.f32.mrf.mxu0  ;;  %2491 = vtanh.f32 %v1341_v43 }
 0x354   :  { %v1330_v61 = vadd.f32 %v2301_v7, %v438_v35  ;;  %v1342_v0 = vmul.f32 0.5, %v1317_v36  ;;  %v3871_v35 = vld [vmem:[#allocation41_spill] sm:$0xff]  ;;  %vm3384_vm13 = vcmp.eq.s32.totalorder %v1377_v31, 1 }
 0x355   :  { %v2480_v38 = vpop.eup %2479  ;;  %v1273_v6 = vpop.f32.mrf.mxu0  ;;  %v448_v43 = vadd.f32 %v3871_v35, %v3084_v47 }
 0x356   :  { %v1351_v39 = vmul.f32 0.5, %v2480_v38  ;;  %v1386_v53 = vmul.f32 0.5, %v1330_v61  ;;  %v1328_v32 = vadd.f32 %v1273_v6, %v428_v28 }
 0x357   :  { %v2482_v42 = vpop.eup %2481  ;;  %v2302_v20 = vpop.f32.mrf.mxu0 }
 0x358   :  { %v1357_v58 = vadd.f32 0.5, %v1351_v39  ;;  %v1349_v1 = vmul.f32 0.5, %v2482_v42  ;;  %2493 = vtanh.f32 %v1386_v53  ;;  %v1384_v41 = vmul.f32 0.5, %v1328_v32  ;;  %v3872_v39 = vld [vmem:[#allocation53_spill] sm:$0xff] }
 0x359   :  { %v2484_v29 = vpop.eup %2483  ;;  %v1331_v10 = vadd.f32 %v2302_v20, %v442_v44  ;;  %v1276_v4 = vpop.f32.mrf.mxu0  ;;  %v462_v53 = vadd.f32 %v3872_v39, %v3062_v11  ;;  %v3894_v20 = vld [vmem:[#allocation59_spill] sm:$0xff] }
 0x35a   :  { %v1363_v55 = vmul.f32 %v1357_v58, %v3273_v26  ;;  %v1355_v33 = vadd.f32 0.5, %v1349_v1  ;;  %v1352_v34 = vmul.f32 0.5, %v2484_v29  ;;  %2495 = vtanh.f32 %v1384_v41 }
 0x35b   :  { %v2486_v60 = vpop.eup %2485  ;;  %v1387_v36 = vmul.f32 0.5, %v1331_v10  ;;  %v1329_v7 = vadd.f32 %v1276_v4, %v432_v2  ;;  %v2305_v37 = vpop.f32.mrf.mxu0  ;;  %2497 = vtanh.f32 %v1342_v0 }
 0x35c   :  { %v2488_v28 = vpop.eup %2487  ;;  %v1358_v61 = vadd.f32 0.5, %v1352_v34  ;;  %v1350_v38 = vmul.f32 0.5, %v2486_v60  ;;  %v1334_v6 = vadd.f32 %v2305_v37, %v458_v63  ;;  %v3875_v63 = vld [vmem:[#allocation45_spill] sm:$0xff] }
 0x35d   :  { %v1365_v32 = vmul.f32 %v2488_v28, %v1355_v33  ;;  %2499 = vtanh.f32 %v1387_v36  ;;  %v1385_v50 = vmul.f32 0.5, %v1329_v7  ;;  %v1289_v42 = vpop.f32.mrf.mxu0  ;;  %v452_v10 = vadd.f32 %v3875_v63, %v3852_v19 }
 0x35e   :  { %v1364_v13 = vmul.f32 %v1358_v61, %v3280_v23  ;;  %v1356_v44 = vadd.f32 0.5, %v1350_v38  ;;  %2501 = vtanh.f32 %v1334_v6  ;;  %v1332_v41 = vadd.f32 %v1289_v42, %v448_v43 }
 0x35f   :  { %v1367_v58 = vadd.f32 %v1365_v32, %v1363_v55  ;;  %2503 = vtanh.f32 %v1385_v50  ;;  %v2306_v1 = vpop.f32.mrf.mxu0  ;;  %v2490_v0 = vpop.eup %2489  ;;  %v1420_v33 = vsel %vm1383_vm14, 1, %v3844_v52  ;;  %v509_v42 = vadd.f32 %v3894_v20, %v3036_v15 }
 0x360   :  { %v1335_v29 = vadd.f32 %v2306_v1, %v462_v53  ;;  %v1366_v27 = vmul.f32 %v2490_v0, %v1356_v44  ;;  %v2492_v31 = vpop.eup %2491  ;;  %v1388_v55 = vmul.f32 0.5, %v1332_v41  ;;  %v1424_v43 = vrot.slane %v1420_v33, %v3184_v5 }
 0x361   :  { %2505 = vtanh.f32 %v1367_v58  ;;  %v3392_v2 = vsel %vm3384_vm13, %v1367_v58, %v3273_v26  ;;  %v1292_v18 = vpop.f32.mrf.mxu0  ;;  %v1353_v36 = vmul.f32 0.5, %v2492_v31 }
 0x362   :  { %v1368_v4 = vadd.f32 %v1366_v27, %v1364_v13  ;;  %2507 = vtanh.f32 %v1335_v29  ;;  %v1333_v60 = vadd.f32 %v1292_v18, %v452_v10  ;;  %vm3404_vm15 = vcmp.eq.s32.totalorder %v1424_v43, 1 }
 0x363   :  { %v1359_v50 = vadd.f32 0.5, %v1353_v36 }
 0x364   :  { %2509 = vtanh.f32 %v1368_v4  ;;  %v3400_v49 = vsel %vm3384_vm13, %v1368_v4, %v3280_v23  ;;  %v1389_v61 = vmul.f32 0.5, %v1333_v60 }
 0x365   :  { %v2494_v34 = vpop.eup %2493  ;;  %2511 = vtanh.f32 %v1388_v55 }
 0x366   :  { %v1398_v26 = vmul.f32 0.5, %v2494_v34  ;;  %2513 = vtanh.f32 %v1389_v61 }
 0x367   :  { %v2496_v35 = vpop.eup %2495 }
 0x368   :  { %v1404_v7 = vadd.f32 0.5, %v1398_v26  ;;  %v1396_v37 = vmul.f32 0.5, %v2496_v35  ;;  %v2498_v28 = vpop.eup %2497 }
 0x369   :  { %v1354_v5 = vmul.f32 0.5, %v2498_v28 }
 0x36a   :  { %v2500_v38 = vpop.eup %2499  ;;  %v1410_v52 = vmul.f32 %v1404_v7, %v3298_v57  ;;  %v1402_v6 = vadd.f32 0.5, %v1396_v37 }
 0x36b   :  { %v2502_v39 = vpop.eup %2501  ;;  %v1399_v53 = vmul.f32 0.5, %v2500_v38  ;;  %v1360_v63 = vadd.f32 0.5, %v1354_v5  ;;  %v3878_v5 = vld [vmem:[#allocation11_spill] sm:$0xff] }
 0x36c   :  { %v2504_v32 = vpop.eup %2503  ;;  %v1412_v23 = vmul.f32 %v2502_v39, %v1402_v6  ;;  %v3467_v39 = vld [vmem:[%s3767_s5 + $0x20] sm:$0xff]  }
 0x36d   :  { %v1405_v13 = vadd.f32 0.5, %v1399_v53  ;;  %v1397_v44 = vmul.f32 0.5, %v2504_v32  ;;  %v3474_v53 = vld [vmem:[%s3767_s5 + $0x28] sm:$0xff]   ;;  %v3481_v32 = vld [vmem:[%s3767_s5 + $0x30] sm:$0xff]  }
 0x36e   :  { %v2506_v58 = vpop.eup %2505  ;;  %v1414_v1 = vadd.f32 %v1412_v23, %v1410_v52  ;;  %v2646_v23 = vld [vmem:[%s3767_s5] sm:$0xff]  }
 0x36f   :  { %v1371_v0 = vmul.f32 %v2506_v58, %v1359_v50  ;;  %v1411_v41 = vmul.f32 %v1405_v13, %v3313_v62  ;;  %v1403_v29 = vadd.f32 0.5, %v1397_v44  ;;  %v2508_v27 = vpop.eup %2507  ;;  %v3488_v50 = vld [vmem:[%s3767_s5 + $0x38] sm:$0xff]   ;;  %v398_v13 = vadd.f32 %v3878_v5, %v3036_v15  ;;  %v3879_v58 = vld [vmem:[#allocation7_spill] sm:$0xff] }
 0x370   :  { %2515 = vtanh.f32 %v1414_v1  ;;  %v3412_v18 = vsel %vm3404_vm15, %v1414_v1, %v3298_v57  ;;  %v388_v1 = vadd.f32 %v3879_v58, %v3020_v25  ;;  %v3884_v5 = vld [vmem:[#allocation21_spill] sm:$0xff] }
 0x371   :  { %v1413_v10 = vmul.f32 %v2508_v27, %v1403_v29  ;;  %v2510_v4 = vpop.eup %2509  ;;  %v3439_v6 = vsel %vm3384_vm13, %v1371_v0, %v3302_v56  ;;  %v3453_v56 = vld [vmem:[%s3767_s5 + $0x10] sm:$0xff]   ;;  %v3880_v29 = vld [vmem:[#allocation13_spill] sm:$0xff] }
 0x372   :  { %v1372_v31 = vmul.f32 %v2510_v4, %v1360_v63  ;;  %v2512_v33 = vpop.eup %2511  ;;  %v402_v27 = vadd.f32 %v3880_v29, %v3046_v12 }
 0x373   :  { %v1415_v55 = vadd.f32 %v1413_v10, %v1411_v41  ;;  %v1400_v60 = vmul.f32 0.5, %v2512_v33  ;;  %v2514_v26 = vpop.eup %2513 }
 0x374   :  { %v1401_v36 = vmul.f32 0.5, %v2514_v26 }
 0x375   :  { %2517 = vtanh.f32 %v1415_v55  ;;  %v3417_v34 = vsel %vm3404_vm15, %v1415_v55, %v3313_v62  ;;  %v1406_v35 = vadd.f32 0.5, %v1400_v60  ;;  %v3432_v62 = vsel %vm3384_vm13, %v1372_v31, %v3309_v54  ;;  %v3446_v54 = vld [vmem:[%s3767_s5 + $0x8] sm:$0xff]   ;;  %v3881_v31 = vld [vmem:[#allocation9_spill] sm:$0xff] }
 0x376   :  { %v1407_v57 = vadd.f32 0.5, %v1401_v36  ;;  %v392_v55 = vadd.f32 %v3881_v31, %v3030_v30 }
 0x37d   :  { %v2516_v43 = vpop.eup %2515 }
 0x37e   :  { %v1418_v7 = vmul.f32 %v2516_v43, %v1406_v35  ;;  %v3882_v35 = vld [vmem:[#allocation19_spill] sm:$0xff] }
 0x37f   :  { %v418_v43 = vadd.f32 %v3882_v35, %v3068_v21 }
 0x380   :  { %v3422_v61 = vsel %vm3404_vm15, %v1418_v7, %v3320_v3  ;;  %v1430_v3 = vpack.c.bf16 %v3432_v62, %v3439_v6 }
 0x382   :  { %v2518_v37 = vpop.eup %2517 }
 0x383   :  { %v1419_v28 = vmul.f32 %v2518_v37, %v1407_v57 }
 0x385   :  { %v3427_v38 = vsel %vm3404_vm15, %v1419_v28, %v3327_v24  ;;  %v3460_v24 = vld [vmem:[%s3767_s5 + $0x18] sm:$0xff]  }
 0x386   :  { %v1431_v52 = vpack.c.bf16 %v3427_v38, %v3422_v61 }
 0x388   :  { %2307 = vmatprep.subr.bf16.mxu1 %v1431_v52 }
 0x389   :  { %2308 = vmatpush3.bf16.msra.mxu1 %v1431_v52  ;;  %v3883_v52 = vld [vmem:[#allocation15_spill] sm:$0xff] }
 0x38a   :  { %2309 = vmatprep.subr.bf16.mxu1 %v1430_v3 }
 0x38d   :  { %2310 = vmatpush3.bf16.msra.mxu1 %v1430_v3  ;;  %v408_v3 = vadd.f32 %v3883_v52, %v3100_v48 }
 0x390   :  { %2312 = vmatmul.mubr.msk.bf16.vlgmr.msra.gmra.mxu1 %vm732_vm1, %v3446_v54 }
 0x391   :  { %2315 = vmatprep.mubr.msk.bf16.mxu1 %vm732_vm1, %v3453_v56 }
 0x398   :  { %2316 = vmatmul.mubr.msk.bf16.gmra.mxu1 %vm732_vm1, %v3460_v24 }
 0x399   :  { %2319 = vmatprep.mubr.msk.bf16.mxu1 %vm732_vm1, %v3467_v39 }
 0x3a0   :  { %2320 = vmatmul.mubr.msk.bf16.gmra.mxu1 %vm732_vm1, %v3474_v53 }
 0x3a1   :  { %2323 = vmatprep.mubr.msk.bf16.mxu1 %vm732_vm1, %v3481_v32 }
 0x3a8   :  { %2324 = vmatmul.mubr.msk.bf16.gmra.mxu1 %vm732_vm1, %v3488_v50 }
 0x3a9   :  { %2351 = vmatprep.mubr.msk.bf16.mxu1 %vm732_vm1, %v2646_v23 }
 0x450   :  { %v2313_v44 = vpop.f32.mrf.mxu1 }
 0x451   :  { %v1539_v0 = vadd.f32 %v2313_v44, %v398_v13  ;;  %v422_v13 = vadd.f32 %v3884_v5, %v3080_v59 }
 0x452   :  { %v1466_v41 = vpop.f32.mrf.mxu1 }
 0x453   :  { %v1563_v63 = vmul.f32 0.5, %v1539_v0  ;;  %v1537_v10 = vadd.f32 %v1466_v41, %v388_v1  ;;  %v3885_v0 = vld [vmem:[#allocation17_spill] sm:$0xff] }
 0x454   :  { %v2314_v4 = vpop.f32.mrf.mxu1  ;;  %v412_v41 = vadd.f32 %v3885_v0, %v3110_v40  ;;  %v3890_v0 = vld [vmem:[#allocation47_spill] sm:$0xff] }
 0x455   :  { %2519 = vtanh.f32 %v1563_v63  ;;  %v1561_v33 = vmul.f32 0.5, %v1537_v10  ;;  %v1540_v60 = vadd.f32 %v2314_v4, %v402_v27  ;;  %v3886_v27 = vld [vmem:[#allocation31_spill] sm:$0xff] }
 0x456   :  { %v1469_v26 = vpop.f32.mrf.mxu1  ;;  %v436_v63 = vadd.f32 %v3886_v27, %v2998_v14 }
 0x457   :  { %2521 = vtanh.f32 %v1561_v33  ;;  %v1564_v36 = vmul.f32 0.5, %v1540_v60  ;;  %v1538_v7 = vadd.f32 %v1469_v26, %v392_v55  ;;  %v3887_v55 = vld [vmem:[#allocation23_spill] sm:$0xff] }
 0x458   :  { %v2317_v57 = vpop.f32.mrf.mxu1  ;;  %v426_v33 = vadd.f32 %v3887_v55, %v2988_v9 }
 0x459   :  { %2523 = vtanh.f32 %v1564_v36  ;;  %v1562_v37 = vmul.f32 0.5, %v1538_v7  ;;  %v1543_v28 = vadd.f32 %v2317_v57, %v418_v43 }
 0x45a   :  { %v1482_v23 = vpop.f32.mrf.mxu1 }
 0x45b   :  { %2525 = vtanh.f32 %v1562_v37  ;;  %v1541_v44 = vadd.f32 %v1482_v23, %v408_v3  ;;  %v3888_v37 = vld [vmem:[#allocation35_spill] sm:$0xff] }
 0x45c   :  { %2527 = vtanh.f32 %v1543_v28  ;;  %v2318_v58 = vpop.f32.mrf.mxu1  ;;  %v440_v28 = vadd.f32 %v3888_v37, %v3014_v22 }
 0x45d   :  { %v1544_v1 = vadd.f32 %v2318_v58, %v422_v13  ;;  %v1565_v10 = vmul.f32 0.5, %v1541_v44  ;;  %v3889_v58 = vld [vmem:[#allocation27_spill] sm:$0xff] }
 0x45e   :  { %v1485_v29 = vpop.f32.mrf.mxu1 }
 0x45f   :  { %2529 = vtanh.f32 %v1544_v1  ;;  %v1542_v4 = vadd.f32 %v1485_v29, %v412_v41  ;;  %v430_v1 = vadd.f32 %v3889_v58, %v3004_v17  ;;  %v456_v41 = vadd.f32 %v3890_v0, %v3052_v16 }
 0x460   :  { %v2321_v31 = vpop.f32.mrf.mxu1  ;;  %2531 = vtanh.f32 %v1565_v10 }
 0x461   :  { %v1555_v60 = vadd.f32 %v2321_v31, %v436_v63  ;;  %v1566_v52 = vmul.f32 0.5, %v1542_v4 }
 0x462   :  { %v2520_v26 = vpop.eup %2519  ;;  %v1498_v35 = vpop.f32.mrf.mxu1 }
 0x463   :  { %v1575_v43 = vmul.f32 0.5, %v2520_v26  ;;  %v1603_v36 = vmul.f32 0.5, %v1555_v60  ;;  %v1553_v7 = vadd.f32 %v1498_v35, %v426_v33 }
 0x464   :  { %v2522_v57 = vpop.eup %2521  ;;  %v2322_v3 = vpop.f32.mrf.mxu1 }
 0x465   :  { %v1581_v23 = vadd.f32 0.5, %v1575_v43  ;;  %v1573_v5 = vmul.f32 0.5, %v2522_v57  ;;  %2533 = vtanh.f32 %v1603_v36  ;;  %v1601_v13 = vmul.f32 0.5, %v1553_v7  ;;  %v3891_v7 = vld [vmem:[#allocation39_spill] sm:$0xff] }
 0x466   :  { %v2524_v44 = vpop.eup %2523  ;;  %v1556_v29 = vadd.f32 %v2322_v3, %v440_v28  ;;  %v1501_v27 = vpop.f32.mrf.mxu1  ;;  %v446_v57 = vadd.f32 %v3891_v7, %v3084_v47 }
 0x467   :  { %v1587_v63 = vmul.f32 %v1581_v23, %v3392_v2  ;;  %v1579_v31 = vadd.f32 0.5, %v1573_v5  ;;  %v1576_v55 = vmul.f32 0.5, %v2524_v44  ;;  %2535 = vtanh.f32 %v1601_v13  ;;  %v3892_v23 = vld [vmem:[#allocation51_spill] sm:$0xff] }
 0x468   :  { %v2526_v10 = vpop.eup %2525  ;;  %v1604_v4 = vmul.f32 0.5, %v1556_v29  ;;  %v1554_v33 = vadd.f32 %v1501_v27, %v430_v1  ;;  %v2325_v60 = vpop.f32.mrf.mxu1  ;;  %2537 = vtanh.f32 %v1566_v52  ;;  %v460_v5 = vadd.f32 %v3892_v23, %v3062_v11 }
 0x469   :  { %v2528_v26 = vpop.eup %2527  ;;  %v1582_v35 = vadd.f32 0.5, %v1576_v55  ;;  %v1574_v43 = vmul.f32 0.5, %v2526_v10  ;;  %v1559_v36 = vadd.f32 %v2325_v60, %v456_v41  ;;  %v3893_v55 = vld [vmem:[#allocation43_spill] sm:$0xff] }
 0x46a   :  { %v1589_v37 = vmul.f32 %v2528_v26, %v1579_v31  ;;  %2539 = vtanh.f32 %v1604_v4  ;;  %v1602_v28 = vmul.f32 0.5, %v1554_v33  ;;  %v1514_v3 = vpop.f32.mrf.mxu1  ;;  %v450_v10 = vadd.f32 %v3893_v55, %v3852_v19 }
 0x46b   :  { %v1588_v13 = vmul.f32 %v1582_v35, %v3400_v49  ;;  %v1580_v44 = vadd.f32 0.5, %v1574_v43  ;;  %2541 = vtanh.f32 %v1559_v36  ;;  %v1557_v52 = vadd.f32 %v1514_v3, %v446_v57 }
 0x46c   :  { %v1591_v58 = vadd.f32 %v1589_v37, %v1587_v63  ;;  %2543 = vtanh.f32 %v1602_v28  ;;  %v2326_v1 = vpop.f32.mrf.mxu1  ;;  %v2530_v0 = vpop.eup %2529 }
 0x46d   :  { %v1560_v41 = vadd.f32 %v2326_v1, %v460_v5  ;;  %v1590_v29 = vmul.f32 %v2530_v0, %v1580_v44  ;;  %v2532_v33 = vpop.eup %2531  ;;  %v1605_v63 = vmul.f32 0.5, %v1557_v52 }
 0x46e   :  { %2545 = vtanh.f32 %v1591_v58  ;;  %v3531_v27 = vsel %vm3404_vm15, %v1591_v58, %v3392_v2  ;;  %v1517_v31 = vpop.f32.mrf.mxu1  ;;  %v1577_v2 = vmul.f32 0.5, %v2532_v33 }
 0x46f   :  { %v1592_v4 = vadd.f32 %v1590_v29, %v1588_v13  ;;  %2547 = vtanh.f32 %v1560_v41  ;;  %v1558_v26 = vadd.f32 %v1517_v31, %v450_v10 }
 0x470   :  { %v1583_v1 = vadd.f32 0.5, %v1577_v2 }
 0x471   :  { %2549 = vtanh.f32 %v1592_v4  ;;  %v3538_v35 = vsel %vm3404_vm15, %v1592_v4, %v3400_v49  ;;  %v1606_v28 = vmul.f32 0.5, %v1558_v26 }
 0x472   :  { %v2534_v60 = vpop.eup %2533  ;;  %2551 = vtanh.f32 %v1605_v63 }
 0x473   :  { %v1615_v43 = vmul.f32 0.5, %v2534_v60  ;;  %2553 = vtanh.f32 %v1606_v28 }
 0x474   :  { %v2536_v36 = vpop.eup %2535 }
 0x475   :  { %v1621_v7 = vadd.f32 0.5, %v1615_v43  ;;  %v1613_v57 = vmul.f32 0.5, %v2536_v36  ;;  %v2538_v37 = vpop.eup %2537 }
 0x476   :  { %v1578_v52 = vmul.f32 0.5, %v2538_v37 }
 0x477   :  { %v2540_v3 = vpop.eup %2539  ;;  %v1627_v23 = vmul.f32 %v1621_v7, %v3412_v18  ;;  %v1619_v5 = vadd.f32 0.5, %v1613_v57 }
 0x478   :  { %v2542_v13 = vpop.eup %2541  ;;  %v1616_v44 = vmul.f32 0.5, %v2540_v3  ;;  %v1584_v60 = vadd.f32 0.5, %v1578_v52 }
 0x479   :  { %v2544_v58 = vpop.eup %2543  ;;  %v1629_v0 = vmul.f32 %v2542_v13, %v1619_v5 }
 0x47a   :  { %v1622_v49 = vadd.f32 0.5, %v1616_v44  ;;  %v1614_v41 = vmul.f32 0.5, %v2544_v58 }
 0x47b   :  { %v2546_v29 = vpop.eup %2545  ;;  %v1631_v31 = vadd.f32 %v1629_v0, %v1627_v23 }
 0x47c   :  { %v1595_v55 = vmul.f32 %v2546_v29, %v1583_v1  ;;  %v1628_v10 = vmul.f32 %v1622_v49, %v3417_v34  ;;  %v1620_v4 = vadd.f32 0.5, %v1614_v41  ;;  %v2548_v33 = vpop.eup %2547 }
 0x47d   :  { %2555 = vtanh.f32 %v1631_v31  ;;  %v3545_v63 = vsel %vm3384_vm13, %v1631_v31, %v3412_v18  ;;  %v3896_v31 = vld [vmem:[#allocation61_spill] sm:$0xff] }
 0x47e   :  { %v1630_v26 = vmul.f32 %v2548_v33, %v1620_v4  ;;  %v2550_v43 = vpop.eup %2549  ;;  %v3572_v49 = vsel %vm3404_vm15, %v1595_v55, %v3439_v6  ;;  %v513_v55 = vadd.f32 %v3896_v31, %v3046_v12 }
 0x47f   :  { %v1596_v36 = vmul.f32 %v2550_v43, %v1584_v60  ;;  %v2552_v7 = vpop.eup %2551  ;;  %v3897_v60 = vld [vmem:[#allocation56_spill] sm:$0xff] }
 0x480   :  { %v1632_v2 = vadd.f32 %v1630_v26, %v1628_v10  ;;  %v1617_v37 = vmul.f32 0.5, %v2552_v7  ;;  %v2554_v28 = vpop.eup %2553  ;;  %v503_v26 = vadd.f32 %v3897_v60, %v3030_v30  ;;  %v3898_v7 = vld [vmem:[#allocation67_spill] sm:$0xff] }
 0x481   :  { %v1618_v5 = vmul.f32 0.5, %v2554_v28 }
 0x482   :  { %2557 = vtanh.f32 %v1632_v2  ;;  %v3550_v57 = vsel %vm3384_vm13, %v1632_v2, %v3417_v34  ;;  %v1623_v3 = vadd.f32 0.5, %v1617_v37  ;;  %v3565_v34 = vsel %vm3404_vm15, %v1596_v36, %v3432_v62  ;;  %v3895_v62 = vld [vmem:[#allocation54_spill] sm:$0xff] }
 0x483   :  { %v1624_v18 = vadd.f32 0.5, %v1618_v5  ;;  %v499_v6 = vadd.f32 %v3895_v62, %v3020_v25  ;;  %v529_v37 = vadd.f32 %v3898_v7, %v3068_v21  ;;  %v3901_v62 = vld [vmem:[#allocation65_spill] sm:$0xff] }
 0x48a   :  { %v2556_v23 = vpop.eup %2555 }
 0x48b   :  { %v1635_v13 = vmul.f32 %v2556_v23, %v1623_v3 }
 0x48d   :  { %v3555_v1 = vsel %vm3384_vm13, %v1635_v13, %v3422_v61  ;;  %v1641_v61 = vpack.c.bf16 %v3565_v34, %v3572_v49 }
 0x48f   :  { %v2558_v44 = vpop.eup %2557 }
 0x490   :  { %v1636_v58 = vmul.f32 %v2558_v44, %v1624_v18  ;;  %v3899_v18 = vld [vmem:[#allocation63_spill] sm:$0xff] }
 0x491   :  { %v519_v44 = vadd.f32 %v3899_v18, %v3100_v48 }
 0x492   :  { %v3560_v0 = vsel %vm3384_vm13, %v1636_v58, %v3427_v38 }
 0x493   :  { %v1642_v52 = vpack.c.bf16 %v3560_v0, %v3555_v1 }
 0x495   :  { %2327 = vmatprep.subr.bf16.mxu0 %v1642_v52 }
 0x496   :  { %2328 = vmatpush3.bf16.msra.mxu0 %v1642_v52  ;;  %v3900_v52 = vld [vmem:[#allocation69_spill] sm:$0xff] }
 0x497   :  { %2329 = vmatprep.subr.bf16.mxu0 %v1641_v61 }
 0x49a   :  { %2330 = vmatpush3.bf16.msra.mxu0 %v1641_v61  ;;  %v533_v61 = vadd.f32 %v3900_v52, %v3080_v59 }
 0x49d   :  { %2332 = vmatmul.mubr.msk.bf16.vlgmr.msra.gmra.mxu0 %vm732_vm1, %v3446_v54 }
 0x49e   :  { %2335 = vmatprep.mubr.msk.bf16.mxu0 %vm732_vm1, %v3453_v56 }
 0x4a5   :  { %2336 = vmatmul.mubr.msk.bf16.gmra.mxu0 %vm732_vm1, %v3460_v24 }
 0x4a6   :  { %2339 = vmatprep.mubr.msk.bf16.mxu0 %vm732_vm1, %v3467_v39 }
 0x4ad   :  { %2340 = vmatmul.mubr.msk.bf16.gmra.mxu0 %vm732_vm1, %v3474_v53 }
 0x4ae   :  { %2343 = vmatprep.mubr.msk.bf16.mxu0 %vm732_vm1, %v3481_v32 }
 0x4b5   :  { %2344 = vmatmul.mubr.msk.bf16.gmra.mxu0 %vm732_vm1, %v3488_v50 }
 0x55d   :  { %v2333_v38 = vpop.f32.mrf.mxu0 }
 0x55e   :  { %v1750_v41 = vadd.f32 %v2333_v38, %v509_v42 }
 0x55f   :  { %v1677_v29 = vpop.f32.mrf.mxu0 }
 0x560   :  { %v1774_v10 = vmul.f32 0.5, %v1750_v41  ;;  %v1748_v4 = vadd.f32 %v1677_v29, %v499_v6  ;;  %v523_v6 = vadd.f32 %v3901_v62, %v3110_v40  ;;  %v3902_v29 = vld [vmem:[#allocation32_spill] sm:$0xff] }
 0x561   :  { %v2334_v33 = vpop.f32.mrf.mxu0  ;;  %v325_v31 = vadd.f32 %v3902_v29, %v2998_v14 }
 0x562   :  { %2559 = vtanh.f32 %v1774_v10  ;;  %v1772_v43 = vmul.f32 0.5, %v1748_v4  ;;  %v1751_v36 = vadd.f32 %v2334_v33, %v513_v55  ;;  %v3903_v33 = vld [vmem:[#allocation24_spill] sm:$0xff] }
 0x563   :  { %v1680_v2 = vpop.f32.mrf.mxu0  ;;  %v315_v60 = vadd.f32 %v3903_v33, %v2988_v9 }
 0x564   :  { %2561 = vtanh.f32 %v1772_v43  ;;  %v1775_v28 = vmul.f32 0.5, %v1751_v36  ;;  %v1749_v3 = vadd.f32 %v1680_v2, %v503_v26 }
 0x565   :  { %v2337_v23 = vpop.f32.mrf.mxu0 }
 0x566   :  { %2563 = vtanh.f32 %v1775_v28  ;;  %v1773_v5 = vmul.f32 0.5, %v1749_v3  ;;  %v1754_v13 = vadd.f32 %v2337_v23, %v529_v37  ;;  %v3904_v3 = vld [vmem:[#allocation36_spill] sm:$0xff] }
 0x567   :  { %v1693_v58 = vpop.f32.mrf.mxu0  ;;  %v329_v23 = vadd.f32 %v3904_v3, %v3014_v22 }
 0x568   :  { %2565 = vtanh.f32 %v1773_v5  ;;  %v1752_v20 = vadd.f32 %v1693_v58, %v519_v44 }
 0x569   :  { %2567 = vtanh.f32 %v1754_v13  ;;  %v2338_v42 = vpop.f32.mrf.mxu0 }
 0x56a   :  { %v1755_v38 = vadd.f32 %v2338_v42, %v533_v61  ;;  %v1776_v55 = vmul.f32 0.5, %v1752_v20  ;;  %v3905_v61 = vld [vmem:[#allocation28_spill] sm:$0xff] }
 0x56b   :  { %v1696_v41 = vpop.f32.mrf.mxu0  ;;  %v319_v20 = vadd.f32 %v3905_v61, %v3004_v17  ;;  %v3906_v42 = vld [vmem:[#allocation48_spill] sm:$0xff] }
 0x56c   :  { %2569 = vtanh.f32 %v1755_v38  ;;  %v1753_v10 = vadd.f32 %v1696_v41, %v523_v6  ;;  %v345_v38 = vadd.f32 %v3906_v42, %v3052_v16 }
 0x56d   :  { %v2341_v4 = vpop.f32.mrf.mxu0  ;;  %2571 = vtanh.f32 %v1776_v55 }
 0x56e   :  { %v1766_v26 = vadd.f32 %v2341_v4, %v325_v31  ;;  %v1777_v5 = vmul.f32 0.5, %v1753_v10 }
 0x56f   :  { %v2560_v43 = vpop.eup %2559  ;;  %v1709_v36 = vpop.f32.mrf.mxu0 }
 0x570   :  { %v1786_v2 = vmul.f32 0.5, %v2560_v43  ;;  %v1814_v7 = vmul.f32 0.5, %v1766_v26  ;;  %v1764_v37 = vadd.f32 %v1709_v36, %v315_v60 }
 0x571   :  { %v2562_v28 = vpop.eup %2561  ;;  %v2342_v13 = vpop.f32.mrf.mxu0 }
 0x572   :  { %v1792_v18 = vadd.f32 0.5, %v1786_v2  ;;  %v1784_v44 = vmul.f32 0.5, %v2562_v28  ;;  %2573 = vtanh.f32 %v1814_v7  ;;  %v1812_v58 = vmul.f32 0.5, %v1764_v37  ;;  %v3907_v2 = vld [vmem:[#allocation40_spill] sm:$0xff] }
 0x573   :  { %v2564_v52 = vpop.eup %2563  ;;  %v1767_v62 = vadd.f32 %v2342_v13, %v329_v23  ;;  %v1712_v6 = vpop.f32.mrf.mxu0  ;;  %v335_v7 = vadd.f32 %v3907_v2, %v3084_v47  ;;  %v3908_v23 = vld [vmem:[#allocation52_spill] sm:$0xff] }
 0x574   :  { %v1798_v41 = vmul.f32 %v1792_v18, %v3531_v27  ;;  %v1790_v29 = vadd.f32 0.5, %v1784_v44  ;;  %v1787_v31 = vmul.f32 0.5, %v2564_v52  ;;  %2575 = vtanh.f32 %v1812_v58 }
 0x575   :  { %v2566_v55 = vpop.eup %2565  ;;  %v1815_v10 = vmul.f32 0.5, %v1767_v62  ;;  %v1765_v4 = vadd.f32 %v1712_v6, %v319_v20  ;;  %v2345_v33 = vpop.f32.mrf.mxu0  ;;  %2577 = vtanh.f32 %v1777_v5  ;;  %v349_v13 = vadd.f32 %v3908_v23, %v3062_v11  ;;  %v3909_v6 = vld [vmem:[#allocation44_spill] sm:$0xff] }
 0x576   :  { %v2568_v60 = vpop.eup %2567  ;;  %v1793_v26 = vadd.f32 0.5, %v1787_v31  ;;  %v1785_v43 = vmul.f32 0.5, %v2566_v55  ;;  %v1770_v36 = vadd.f32 %v2345_v33, %v345_v38 }
 0x577   :  { %v1800_v37 = vmul.f32 %v2568_v60, %v1790_v29  ;;  %2579 = vtanh.f32 %v1815_v10  ;;  %v1813_v28 = vmul.f32 0.5, %v1765_v4  ;;  %v1725_v3 = vpop.f32.mrf.mxu0  ;;  %v339_v29 = vadd.f32 %v3909_v6, %v3852_v19 }
 0x578   :  { %v1799_v18 = vmul.f32 %v1793_v26, %v3538_v35  ;;  %v1791_v44 = vadd.f32 0.5, %v1785_v43  ;;  %2581 = vtanh.f32 %v1770_v36  ;;  %v1768_v61 = vadd.f32 %v1725_v3, %v335_v7 }
 0x579   :  { %v3622_v58 = vadd.f32 %v1800_v37, %v1798_v41  ;;  %2583 = vtanh.f32 %v1813_v28  ;;  %v2346_v52 = vpop.f32.mrf.mxu0  ;;  %v2570_v5 = vpop.eup %2569 }
 0x57a   :  { %v1771_v20 = vadd.f32 %v2346_v52, %v349_v13  ;;  %v1801_v42 = vmul.f32 %v2570_v5, %v1791_v44  ;;  %v2572_v41 = vpop.eup %2571  ;;  %v1816_v55 = vmul.f32 0.5, %v1768_v61 }
 0x57b   :  { %2585 = vtanh.f32 %v3622_v58  ;;  %v1810_v38 = vsel %vm3286_vm11, %v3622_v58, %v3531_v27  ;;  %v1728_v62 = vpop.f32.mrf.mxu0  ;;  %v1788_v43 = vmul.f32 0.5, %v2572_v41  ;;  %v3924_v58 = vld [vmem:[#allocation50_spill] sm:$0xff] }
 0x57c   :  { %v3631_v31 = vadd.f32 %v1801_v42, %v1799_v18  ;;  %2587 = vtanh.f32 %v1771_v20  ;;  %v1769_v4 = vadd.f32 %v1728_v62, %v339_v29 }
 0x57d   :  { %v1794_v52 = vadd.f32 0.5, %v1788_v43 }
 0x57e   :  { %2589 = vtanh.f32 %v3631_v31  ;;  %v1811_v33 = vsel %vm3286_vm11, %v3631_v31, %v3538_v35  ;;  %v1817_v37 = vmul.f32 0.5, %v1769_v4 }
 0x57f   :  { %v2574_v10 = vpop.eup %2573  ;;  %2591 = vtanh.f32 %v1816_v55 }
 0x580   :  { %v1826_v60 = vmul.f32 0.5, %v2574_v10  ;;  %2593 = vtanh.f32 %v1817_v37 }
 0x581   :  { %v2576_v26 = vpop.eup %2575 }
 0x582   :  { %v1832_v36 = vadd.f32 0.5, %v1826_v60  ;;  %v1824_v2 = vmul.f32 0.5, %v2576_v26  ;;  %v2578_v7 = vpop.eup %2577 }
 0x583   :  { %v1789_v61 = vmul.f32 0.5, %v2578_v7 }
 0x584   :  { %v2580_v28 = vpop.eup %2579  ;;  %v1838_v3 = vmul.f32 %v1832_v36, %v3545_v63  ;;  %v1830_v23 = vadd.f32 0.5, %v1824_v2 }
 0x585   :  { %v2582_v13 = vpop.eup %2581  ;;  %v1827_v18 = vmul.f32 0.5, %v2580_v28  ;;  %v1795_v60 = vadd.f32 0.5, %v1789_v61 }
 0x586   :  { %v2584_v44 = vpop.eup %2583  ;;  %v1840_v5 = vmul.f32 %v2582_v13, %v1830_v23 }
 0x587   :  { %v1833_v20 = vadd.f32 0.5, %v1827_v18  ;;  %v1825_v42 = vmul.f32 0.5, %v2584_v44 }
 0x588   :  { %v2586_v62 = vpop.eup %2585  ;;  %v3639_v6 = vadd.f32 %v1840_v5, %v1838_v3 }
 0x589   :  { %v1806_v29 = vmul.f32 %v2586_v62, %v1794_v52  ;;  %v1839_v41 = vmul.f32 %v1833_v20, %v3550_v57  ;;  %v1831_v55 = vadd.f32 0.5, %v1825_v42  ;;  %v2588_v10 = vpop.eup %2587 }
 0x58a   :  { %2595 = vtanh.f32 %v3639_v6  ;;  %v1850_v4 = vsel %vm3266_vm9, %v3639_v6, %v3545_v63 }
 0x58b   :  { %v1841_v26 = vmul.f32 %v2588_v10, %v1831_v55  ;;  %v2590_v43 = vpop.eup %2589  ;;  %v3674_v55 = vsel %vm3286_vm11, %v1806_v29, %v3572_v49 }
 0x58c   :  { %v1807_v36 = vmul.f32 %v2590_v43, %v1795_v60  ;;  %v2592_v7 = vpop.eup %2591 }
 0x58d   :  { %v3647_v2 = vadd.f32 %v1841_v26, %v1839_v41  ;;  %v1828_v28 = vmul.f32 0.5, %v2592_v7  ;;  %v2594_v3 = vpop.eup %2593 }
 0x58e   :  { %v1829_v18 = vmul.f32 0.5, %v2594_v3  ;;  %v3667_v62 = vsel %vm3286_vm11, %v1807_v36, %v3565_v34 }
 0x58f   :  { %2597 = vtanh.f32 %v3647_v2  ;;  %v1851_v37 = vsel %vm3266_vm9, %v3647_v2, %v3550_v57  ;;  %v1834_v23 = vadd.f32 0.5, %v1828_v28 }
 0x590   :  { %v1835_v52 = vadd.f32 0.5, %v1829_v18  ;;  %v3915_v18 = vld [vmem:[#allocation64_spill] sm:$0xff] }
 0x597   :  { %v2596_v13 = vpop.eup %2595 }
 0x598   :  { %v1846_v44 = vmul.f32 %v2596_v13, %v1834_v23 }
 0x59a   :  { %v3657_v20 = vsel %vm3266_vm9, %v1846_v44, %v3555_v1  ;;  %v1852_v1 = vpack.c.bf16 %v3667_v62, %v3674_v55  ;;  %v521_v44 = vadd.f32 %v3915_v18, %v3100_v48 }
 0x59c   :  { %v2598_v5 = vpop.eup %2597 }
 0x59d   :  { %v1847_v61 = vmul.f32 %v2598_v5, %v1835_v52 }
 0x59f   :  { %v3662_v42 = vsel %vm3266_vm9, %v1847_v61, %v3560_v0 }
 0x5a0   :  { %v1853_v41 = vpack.c.bf16 %v3662_v42, %v3657_v20 }
 0x5a2   :  { %2347 = vmatprep.subr.bf16.mxu1 %v1853_v41 }
 0x5a3   :  { %2348 = vmatpush3.bf16.msra.mxu1 %v1853_v41 }
 0x5a4   :  { %2349 = vmatprep.subr.bf16.mxu1 %v1852_v1 }
 0x5a7   :  { %2350 = vmatpush3.bf16.msra.mxu1 %v1852_v1 }
 0x5aa   :  { %2352 = vmatmul.mubr.msk.bf16.vlgmr.msra.gmra.mxu1 %vm732_vm1, %v3446_v54  ;;  %v3910_v54 = vld [vmem:[#allocation60_spill] sm:$0xff] }
 0x5ab   :  { %2355 = vmatprep.mubr.msk.bf16.mxu1 %vm732_vm1, %v3453_v56  ;;  %v511_v0 = vadd.f32 %v3910_v54, %v3036_v15  ;;  %v3911_v56 = vld [vmem:[#allocation55_spill] sm:$0xff]  ;;  %v3914_v15 = vld [vmem:[#allocation68_spill] sm:$0xff] }
 0x5ac   :  { %v501_v49 = vadd.f32 %v3911_v56, %v3020_v25  ;;  %v531_v28 = vadd.f32 %v3914_v15, %v3068_v21  ;;  %v3917_v21 = vld [vmem:[#allocation66_spill] sm:$0xff] }
 0x5ad   :  { %v525_v54 = vadd.f32 %v3917_v21, %v3110_v40  ;;  %v3920_v40 = vld [vmem:[#allocation34_spill] sm:$0xff] }
 0x5b2   :  { %2356 = vmatmul.mubr.msk.bf16.gmra.mxu1 %vm732_vm1, %v3460_v24 }
 0x5b3   :  { %2359 = vmatprep.mubr.msk.bf16.mxu1 %vm732_vm1, %v3467_v39  ;;  %v3912_v39 = vld [vmem:[#allocation62_spill] sm:$0xff] }
 0x5b4   :  { %v515_v10 = vadd.f32 %v3912_v39, %v3046_v12 }
 0x5ba   :  { %2360 = vmatmul.mubr.msk.bf16.gmra.mxu1 %vm732_vm1, %v3474_v53 }
 0x5bb   :  { %2363 = vmatprep.mubr.msk.bf16.mxu1 %vm732_vm1, %v3481_v32  ;;  %v3913_v32 = vld [vmem:[#allocation57_spill] sm:$0xff] }
 0x5bc   :  { %v505_v43 = vadd.f32 %v3913_v32, %v3030_v30  ;;  %v3916_v30 = vld [vmem:[#allocation70_spill] sm:$0xff] }
 0x5bd   :  { %v535_v5 = vadd.f32 %v3916_v30, %v3080_v59 }
 0x5c2   :  { %2364 = vmatmul.mubr.msk.bf16.gmra.mxu1 %vm732_vm1, %v3488_v50 }
 0x66a   :  { %v2353_v34 = vpop.f32.mrf.mxu1 }
 0x66b   :  { %v1961_v24 = vadd.f32 %v2353_v34, %v511_v0  ;;  %v3918_v34 = vld [vmem:[#allocation30_spill] sm:$0xff] }
 0x66c   :  { %v1888_v29 = vpop.f32.mrf.mxu1  ;;  %v323_v56 = vadd.f32 %v3918_v34, %v2998_v14 }
 0x66d   :  { %v1985_v60 = vmul.f32 0.5, %v1961_v24  ;;  %v1959_v53 = vadd.f32 %v1888_v29, %v501_v49  ;;  %v3919_v29 = vld [vmem:[#allocation22_spill] sm:$0xff] }
 0x66e   :  { %v2354_v26 = vpop.f32.mrf.mxu1  ;;  %v313_v39 = vadd.f32 %v3919_v29, %v2988_v9  ;;  %v3921_v9 = vld [vmem:[#allocation26_spill] sm:$0xff] }
 0x66f   :  { %2599 = vtanh.f32 %v1985_v60  ;;  %v1983_v50 = vmul.f32 0.5, %v1959_v53  ;;  %v1962_v36 = vadd.f32 %v2354_v26, %v515_v10 }
 0x670   :  { %v1891_v7 = vpop.f32.mrf.mxu1 }
 0x671   :  { %2601 = vtanh.f32 %v1983_v50  ;;  %v1986_v25 = vmul.f32 0.5, %v1962_v36  ;;  %v1960_v3 = vadd.f32 %v1891_v7, %v505_v43  ;;  %v327_v50 = vadd.f32 %v3920_v40, %v3014_v22 }
 0x672   :  { %v2357_v23 = vpop.f32.mrf.mxu1 }
 0x673   :  { %2603 = vtanh.f32 %v1986_v25  ;;  %v1984_v13 = vmul.f32 0.5, %v1960_v3  ;;  %v1965_v12 = vadd.f32 %v2357_v23, %v531_v28  ;;  %v317_v3 = vadd.f32 %v3921_v9, %v3004_v17  ;;  %v3922_v23 = vld [vmem:[#allocation46_spill] sm:$0xff] }
 0x674   :  { %v1904_v52 = vpop.f32.mrf.mxu1 }
 0x675   :  { %2605 = vtanh.f32 %v1984_v13  ;;  %v1963_v61 = vadd.f32 %v1904_v52, %v521_v44  ;;  %v343_v13 = vadd.f32 %v3922_v23, %v3052_v16 }
 0x676   :  { %2607 = vtanh.f32 %v1965_v12  ;;  %v2358_v41 = vpop.f32.mrf.mxu1 }
 0x677   :  { %v1966_v1 = vadd.f32 %v2358_v41, %v535_v5  ;;  %v1987_v49 = vmul.f32 0.5, %v1963_v61 }
 0x678   :  { %v1907_v0 = vpop.f32.mrf.mxu1 }
 0x679   :  { %2609 = vtanh.f32 %v1966_v1  ;;  %v1964_v24 = vadd.f32 %v1907_v0, %v525_v54  ;;  %v3923_v54 = vld [vmem:[#allocation38_spill] sm:$0xff] }
 0x67a   :  { %v2361_v48 = vpop.f32.mrf.mxu1  ;;  %2611 = vtanh.f32 %v1987_v49  ;;  %v333_v0 = vadd.f32 %v3923_v54, %v3084_v47 }
 0x67b   :  { %v1977_v59 = vadd.f32 %v2361_v48, %v323_v56  ;;  %v1988_v36 = vmul.f32 0.5, %v1964_v24 }
 0x67c   :  { %v2600_v10 = vpop.eup %2599  ;;  %v1920_v60 = vpop.f32.mrf.mxu1 }
 0x67d   :  { %v1997_v53 = vmul.f32 0.5, %v2600_v10  ;;  %v2023_v26 = vmul.f32 0.5, %v1977_v59  ;;  %v1975_v32 = vadd.f32 %v1920_v60, %v313_v39 }
 0x67e   :  { %v2602_v43 = vpop.eup %2601  ;;  %v2362_v14 = vpop.f32.mrf.mxu1 }
 0x67f   :  { %v2003_v7 = vadd.f32 0.5, %v1997_v53  ;;  %v1995_v15 = vmul.f32 0.5, %v2602_v43  ;;  %2613 = vtanh.f32 %v2023_v26  ;;  %v2021_v28 = vmul.f32 0.5, %v1975_v32  ;;  %v3925_v53 = vld [vmem:[#allocation42_spill] sm:$0xff] }
 0x680   :  { %v2604_v25 = vpop.eup %2603  ;;  %v1978_v12 = vadd.f32 %v2362_v14, %v327_v50  ;;  %v1923_v18 = vpop.f32.mrf.mxu1 }
 0x681   :  { %v2009_v22 = vmul.f32 %v2003_v7, %v1810_v38  ;;  %v2001_v44 = vadd.f32 0.5, %v1995_v15  ;;  %v1998_v52 = vmul.f32 0.5, %v2604_v25  ;;  %2615 = vtanh.f32 %v2021_v28 }
 0x682   :  { %v2606_v30 = vpop.eup %2605  ;;  %v2024_v5 = vmul.f32 0.5, %v1978_v12  ;;  %v1976_v61 = vadd.f32 %v1923_v18, %v317_v3  ;;  %v2365_v41 = vpop.f32.mrf.mxu1  ;;  %2617 = vtanh.f32 %v1988_v36  ;;  %v347_v38 = vadd.f32 %v3924_v58, %v3062_v11 }
 0x683   :  { %v2608_v1 = vpop.eup %2607  ;;  %v2004_v17 = vadd.f32 0.5, %v1998_v52  ;;  %v1996_v21 = vmul.f32 0.5, %v2606_v30  ;;  %v1981_v16 = vadd.f32 %v2365_v41, %v343_v13  ;;  %v337_v11 = vadd.f32 %v3925_v53, %v3852_v19  ;;  %v2189_v30 = vld [vmem:[%s3764_s2] ss:$0 sm:$0xff]  ;;  %s2671_s2 = smov [#allocation3]  }
 0x684   :  { %v2011_v34 = vmul.f32 %v2608_v1, %v2001_v44  ;;  %2619 = vtanh.f32 %v2024_v5  ;;  %v2022_v56 = vmul.f32 0.5, %v1976_v61  ;;  %v1936_v27 = vpop.f32.mrf.mxu1  ;;  %s2078_s12 = sshll.u32 %s2671_s2, 4  ;;  %s2079_s12 = int_to_ptr.vmem [resolvable:$true] %s2078_s12 }
 0x685   :  { %v2010_v49 = vmul.f32 %v2004_v17, %v1811_v33  ;;  %v2002_v24 = vadd.f32 0.5, %v1996_v21  ;;  %2621 = vtanh.f32 %v1981_v16  ;;  %v1979_v47 = vadd.f32 %v1936_v27, %v333_v0  ;;  %s2647_s13 = scalar_lea.vmem %s2079_s12, 512  ;;  %p2652_p1 = scmp.lt.s32.totalorder %s2079_s12, %s2079_s12 }
 0x686   :  { %v2013_v48 = vadd.f32 %v2011_v34, %v2009_v22  ;;  %2623 = vtanh.f32 %v2022_v56  ;;  %v2366_v29 = vpop.f32.mrf.mxu1  ;;  %v2610_v39 = vpop.eup %2609  ;;  %p2648_p0 = scmp.ne.s32.totalorder %s2079_s12, %s2647_s13  ;;  %p2653_p2 = scmp.lt.s32.totalorder %s2647_s13, %s2647_s13 }
 0x687   :  { %v1982_v59 = vadd.f32 %v2366_v29, %v347_v38  ;;  %v2012_v10 = vmul.f32 %v2610_v39, %v2002_v24  ;;  %v2612_v46 = vpop.eup %2611  ;;  %v2025_v32 = vmul.f32 0.5, %v1979_v47 }
 0x688   :  { %2625 = vtanh.f32 %v2013_v48  ;;  %v1939_v60 = vpop.f32.mrf.mxu1  ;;  %v1999_v40 = vmul.f32 0.5, %v2612_v46  ;;  %p2654_p3 = por %p2653_p2, %p2652_p1 }
 0x689   :  { %v2014_v26 = vadd.f32 %v2012_v10, %v2010_v49  ;;  %2627 = vtanh.f32 %v1982_v59  ;;  %v1980_v31 = vadd.f32 %v1939_v60, %v337_v11 }
 0x68a   :  { %v2005_v23 = vadd.f32 0.5, %v1999_v40  ;;  %p2655_p4 = pnand %p2654_p3, %p2648_p0 }
 0x68b   :  { %2629 = vtanh.f32 %v2014_v26  ;;  %v2026_v7 = vmul.f32 0.5, %v1980_v31 }
 0x68c   :  { %v2614_v35 = vpop.eup %2613  ;;  %2631 = vtanh.f32 %v2025_v32 }
 0x68d   :  { %v2035_v33 = vmul.f32 0.5, %v2614_v35  ;;  %2633 = vtanh.f32 %v2026_v7 }
 0x68e   :  { %v2616_v43 = vpop.eup %2615 }
 0x68f   :  { %v2041_v50 = vadd.f32 0.5, %v2035_v33  ;;  %v2033_v36 = vmul.f32 0.5, %v2616_v43  ;;  %v2618_v14 = vpop.eup %2617 }
 0x690   :  { %v2000_v12 = vmul.f32 0.5, %v2618_v14 }
 0x691   :  { %v2620_v15 = vpop.eup %2619  ;;  %v2047_v19 = vmul.f32 %v2041_v50, %v1850_v4  ;;  %v2039_v28 = vadd.f32 0.5, %v2033_v36 }
 0x692   :  { %v2622_v25 = vpop.eup %2621  ;;  %v2036_v9 = vmul.f32 0.5, %v2620_v15  ;;  %v2006_v41 = vadd.f32 0.5, %v2000_v12 }
 0x693   :  { %v2624_v3 = vpop.eup %2623  ;;  %v2049_v13 = vmul.f32 %v2622_v25, %v2039_v28 }
 0x694   :  { %v2042_v18 = vadd.f32 0.5, %v2036_v9  ;;  %v2034_v22 = vmul.f32 0.5, %v2624_v3 }
 0x695   :  { %v2626_v44 = vpop.eup %2625  ;;  %v2051_v52 = vadd.f32 %v2049_v13, %v2047_v19 }
 0x696   :  { %v2017_v5 = vmul.f32 %v2626_v44, %v2005_v23  ;;  %v2048_v63 = vmul.f32 %v2042_v18, %v1851_v37  ;;  %v2040_v6 = vadd.f32 0.5, %v2034_v22  ;;  %v2628_v4 = vpop.eup %2627 }
 0x697   :  { %2635 = vtanh.f32 %v2051_v52 }
 0x698   :  { %v2019_v61 = vsel %vm3193_vm4, %v2017_v5, %v3674_v55  ;;  %v2050_v1 = vmul.f32 %v2628_v4, %v2040_v6  ;;  %v2630_v17 = vpop.eup %2629 }
 0x699   :  { %v2065_v21 = vmul.f32 %v2189_v30, %v2019_v61  ;;  %v2018_v16 = vmul.f32 %v2630_v17, %v2006_v41  ;;  %v2632_v0 = vpop.eup %2631 }
 0x69a   :  { %v2052_v54 = vadd.f32 %v2050_v1, %v2048_v63  ;;  %v2037_v2 = vmul.f32 0.5, %v2632_v0  ;;  %v2634_v37 = vpop.eup %2633 }
 0x69b   :  { %2067 = vst [vmem:[#allocation3] sm:$0xff] %v2065_v21  ;;  %v2020_v8 = vsel %vm3193_vm4, %v2018_v16, %v3667_v62  ;;  %v2038_v55 = vmul.f32 0.5, %v2634_v37 }
 0x69c   :  { %2637 = vtanh.f32 %v2052_v54  ;;  %v2066_v57 = vmul.f32 %v2189_v30, %v2020_v8  ;;  %v2043_v34 = vadd.f32 0.5, %v2037_v2 }
 0x69d   :  { %v2044_v49 = vadd.f32 0.5, %v2038_v55 }
 0x69e   :  { %2068 = vst [vmem:[#allocation3 + $0x8] sm:$0xff] %v2066_v57 }
 0x6a4   :  { %v2636_v56 = vpop.eup %2635 }
 0x6a5   :  { %v2055_v27 = vmul.f32 %v2636_v56, %v2043_v34 }
 0x6a7   :  { %v2057_v58 = vsel %vm3202_vm6, %v2055_v27, %v3657_v20 }
 0x6a8   :  { %v2069_v38 = vmul.f32 %v2189_v30, %v2057_v58 }
 0x6a9   :  { %v2638_v24 = vpop.eup %2637 }
 0x6aa   :  { %2071 = vst [vmem:[#allocation3 + $0x10] sm:$0xff] %v2069_v38  ;;  %v2056_v45 = vmul.f32 %v2638_v24, %v2044_v49 }
 0x6ac   :  { %v2058_v62 = vsel %vm3202_vm6, %v2056_v45, %v3662_v42 }
 0x6ad   :  { %v2070_v48 = vmul.f32 %v2189_v30, %v2058_v62 }
 0x6af   :  { %2072 = vst [vmem:[#allocation3 + $0x18] sm:$0xff] %v2070_v48 }
 0x6b0   :  { %2658 = shalt.err (!%p2655_p4)
}
 0x6b1   :  { %s2672_s14 = smov 128   ;;  %s2673_s15 = smov 8  }
 0x6b2   :  { %2084 = dma.vmem_to_hbm [thread:$0]  %s2079_s12, 512, %s3768_s6, [#allocation4], %s2672_s14, %s2672_s14, %s2673_s15  }
 0x6b3   :  { %2667 = dma.done.wait [#allocation4], 512  }
 0x6b4   :  { %2668 = vsyncadd [#allocation4], 4294966784 }
 0x6b5   :  { %2088 = vsyncpa [#allocation4], 1 }

</bundles_post_ra>
